<compile_context>
chip_gen: v5e
topology: v5e:2x2
jax: 0.10.0
libtpu: 0.0.40
codegen_flags: <defaults>
</compile_context>

<pallas_src>
import jax
import jax.numpy as jnp
from jax.experimental import pallas as pl
from jax.experimental.pallas import tpu as pltpu

EPS = 1e-5
NEG_SLOPE = 0.2


def _make_kernel(B, L, H):
    C1, C2, C3 = H // 4, H // 2, H
    M = L // 8                     # per-batch length of every phase buffer
    L3 = M
    F = C3 * L3
    N = M * B                      # lane width of every activation slab

    def shift(x, q, c_in):
        # value at position u+q (q in {-1,0,+1}); columns are position-major, so this is
        # a whole-slab shift by q*B lanes with a zero block at the open boundary.
        if q == 0:
            return x
        z = jnp.zeros((c_in, B), jnp.float32)
        if q == -1:
            return jnp.concatenate([z, x[:, :N - B]], axis=1)
        return jnp.concatenate([x[:, B:], z], axis=1)

    def conv_bn_lrelu(in_phases, wcat, bias, gamma, beta, c_in, c_out, p_out):
        # Conv1d(k=5, s=2, p=2) + training-mode BatchNorm1d + LeakyReLU(0.2), polyphase.
        # in_phases: list of 2*p_out slabs (c_in, N); returns p_out slabs (c_out, N).
        p_in = 2 * p_out
        assert len(in_phases) == p_in
        pre = []
        for r in range(p_out):
            blocks = []
            for k in range(5):
                q, s = divmod(2 * r + k - 2, p_in)     # q in {-1, 0, +1}
                blocks.append(shift(in_phases[s], q, c_in))
            rhs = jnp.concatenate(blocks, axis=0).astype(jnp.bfloat16)   # (5*c_in, N)
            pre.append(jnp.dot(wcat, rhs, preferred_element_type=jnp.float32) + bias)
        # BatchNorm1d (training mode): per-channel stats over (batch, length)
        cnt = float(p_out * N)                         # = B * L_out
        s1 = sum(jnp.sum(p, axis=1, keepdims=True) for p in pre)
        s2 = sum(jnp.sum(p * p, axis=1, keepdims=True) for p in pre)
        mean = s1 / cnt
        var = jnp.maximum(s2 / cnt - mean * mean, 0.0)
        scale = jax.lax.rsqrt(var + EPS) * gamma
        shiftv = beta - mean * scale
        out = []
        for p in pre:
            y = p * scale + shiftv
            out.append(jnp.where(y > 0, y, NEG_SLOPE * y))
        return out

    def kernel(xph_ref, emb_ref,
               wc1_ref, bc1_ref, g1_ref, be1_ref,
               wc2_ref, bc2_ref, g2_ref, be2_ref,
               wc3_ref, bc3_ref, g3_ref, be3_ref,
               w1_ref, b1_ref, lng_ref, lnb_ref, w2_ref, b2_ref,
               out_ref, feat_ref):
        # ---- conv stack (polyphase, fully batched) ----
        ph0 = [xph_ref[s:s + 1, :] for s in range(8)]                 # 8 x (1, N)
        h1 = conv_bn_lrelu(ph0, wc1_ref[...], bc1_ref[...], g1_ref[...], be1_ref[...],
                           1, C1, 4)
        h2 = conv_bn_lrelu(h1, wc2_ref[...], bc2_ref[...], g2_ref[...], be2_ref[...],
                           C1, C2, 2)
        h3 = conv_bn_lrelu(h2, wc3_ref[...], bc3_ref[...], g3_ref[...], be3_ref[...],
                           C2, C3, 1)
        y3 = h3[0]                                                    # (C3, L3*B), col = t*B + b

        # ---- classifier_first_layer: one (H, F+H) x (F+H, B) matmul ----
        for t in range(L3):
            feat_ref[t * C3:(t + 1) * C3, :] = y3[:, t * B:(t + 1) * B]
        feat_ref[F:F + H, :] = emb_ref[...]
        hidden = jnp.dot(w1_ref[...], feat_ref[...].astype(jnp.bfloat16),
                         preferred_element_type=jnp.float32) + b1_ref[...]   # (H, B)

        # ---- classifier_second_layer: LayerNorm(H) -> LeakyReLU(0.2) -> Linear(H, 1) ----
        mu = jnp.mean(hidden, axis=0, keepdims=True)
        var = jnp.mean((hidden - mu) ** 2, axis=0, keepdims=True)
        y = (hidden - mu) * jax.lax.rsqrt(var + EPS) * lng_ref[...] + lnb_ref[...]
        y = jnp.where(y > 0, y, NEG_SLOPE * y)
        out_ref[...] = jnp.dot(w2_ref[...], y, preferred_element_type=jnp.float32) + b2_ref[...]

    return kernel


def _bf16_round(a):
    # Keep MXU-facing parameters exactly representable in bf16 so the f32 reference and
    # the bf16-operand kernel agree closely.
    return a.astype(jnp.bfloat16).astype(jnp.float32)


def make_params(key, seq_length, hidden_dim, num_classes):
    H = hidden_dim
    C1, C2, C3 = H // 4, H // 2, H
    L3 = seq_length // 8
    F = C3 * L3
    ks = jax.random.split(key, 11)
    f32 = jnp.float32
    return dict(
        emb=_bf16_round(0.5 * jax.random.normal(ks[0], (num_classes + 1, H), f32)),
        wc1=_bf16_round(0.3 * jax.random.normal(ks[1], (C1, 1, 5), f32)),
        bc1=0.05 * jax.random.normal(ks[2], (C1,), f32),
        wc2=_bf16_round(0.3 * jax.random.normal(ks[3], (C2, C1, 5), f32)),
        bc2=0.05 * jax.random.normal(ks[4], (C2,), f32),
        wc3=_bf16_round(0.3 * jax.random.normal(ks[5], (C3, C2, 5), f32)),
        bc3=0.05 * jax.random.normal(ks[6], (C3,), f32),
        g1=jnp.ones((C1,), f32), be1=jnp.zeros((C1,), f32),
        g2=jnp.ones((C2,), f32), be2=jnp.zeros((C2,), f32),
        g3=jnp.ones((C3,), f32), be3=jnp.zeros((C3,), f32),
        w1=_bf16_round(0.2 * jax.random.normal(ks[7], (H, F + H), f32)),
        b1=0.05 * jax.random.normal(ks[8], (H,), f32),
        ln_g=jnp.ones((H,), f32), ln_b=jnp.zeros((H,), f32),
        w2=0.3 * jax.random.normal(ks[9], (1, H), f32),
        b2=0.05 * jax.random.normal(ks[10], (1,), f32),
    )


def forward_pallas(params, x, labels, hidden_dim):
    B, L, cin = x.shape
    assert cin == 1 and L % 8 == 0 and L >= 8
    H = hidden_dim
    C1, C2, C3 = H // 4, H // 2, H
    M = L // 8
    L3 = M
    N = M * B
    F = C3 * L3
    f32, bf16 = jnp.float32, jnp.bfloat16

    def col(v):
        return v.reshape(-1, 1).astype(f32)

    def wcat(w):
        # (c_out, c_in, 5) -> (c_out, 5*c_in), tap-major columns (matches kernel im2col rows)
        co, ci, k = w.shape
        return jnp.transpose(w, (0, 2, 1)).reshape(co, k * ci).astype(bf16)

    # 8-way polyphase split of the input, position-major / batch-minor lanes:
    # phases0[s, u*B + b] = x[b, 8*u + s, 0]
    x2 = x[:, :, 0].astype(f32)
    phases0 = jnp.transpose(x2.reshape(B, M, 8), (2, 1, 0)).reshape(8, N)

    # TODO(synk): nn.Embedding lookup is a gather; done here as plain-JAX glue indexing.
    emb_t = params['emb'][labels].astype(f32).T                       # (H, B)

    # Permute w1's conv-feature columns from (c*L3 + t) to (t*C3 + c) so they match the
    # kernel's position-major feature slab; embedding columns stay in place.
    w1a = jnp.transpose(params['w1'][:, :F].reshape(H, C3, L3), (0, 2, 1)).reshape(H, F)
    w1p = jnp.concatenate([w1a, params['w1'][:, F:]], axis=1).astype(bf16)   # (H, F+H)

    args = (phases0, emb_t,
            wcat(params['wc1']), col(params['bc1']), col(params['g1']), col(params['be1']),
            wcat(params['wc2']), col(params['bc2']), col(params['g2']), col(params['be2']),
            wcat(params['wc3']), col(params['bc3']), col(params['g3']), col(params['be3']),
            w1p, col(params['b1']), col(params['ln_g']), col(params['ln_b']),
            params['w2'].astype(f32), params['b2'].reshape(1, 1).astype(f32))

    scratch_bytes = (F + H) * B * 4
    arg_bytes = sum(int(a.size) * a.dtype.itemsize for a in args)
    vmem_limit = int(min(max(4 << 20, 4 * (arg_bytes + scratch_bytes)), 48 << 20))

    vmem_spec = pl.BlockSpec(memory_space=pltpu.MemorySpace.VMEM)
    out = pl.pallas_call(
        _make_kernel(B, L, H),
        out_shape=jax.ShapeDtypeStruct((1, B), f32),
        in_specs=[vmem_spec] * len(args),
        out_specs=vmem_spec,
        scratch_shapes=[pltpu.VMEM((F + H, B), f32)],   # flattened conv features + label emb
        compiler_params=pltpu.CompilerParams(vmem_limit_bytes=vmem_limit),
    )(*args)
    return out.T                                        # (B, 1)


def forward_ref(params, x, labels, hidden_dim):
    # Pure-JAX reference of the PyTorch forward (training-mode BatchNorm), f32 math.
    B = x.shape[0]
    emb = params['emb'][labels]
    h = jnp.transpose(x, (0, 2, 1))                     # (B, 1, L)

    def conv1d(h, w, b):
        _, _, l = h.shape
        _, _, k = w.shape
        hp = jnp.pad(h, ((0, 0), (0, 0), (2, 2)))
        lout = (l + 4 - k) // 2 + 1
        cols = jnp.stack([hp[:, :, 2 * t:2 * t + k] for t in range(lout)], axis=2)
        return jnp.einsum('bclk,ock->bol', cols, w) + b[None, :, None]

    def bn_lrelu(h, g, beta):
        mean = jnp.mean(h, axis=(0, 2), keepdims=True)
        var = jnp.mean((h - mean) ** 2, axis=(0, 2), keepdims=True)
        y = (h - mean) * jax.lax.rsqrt(var + EPS) * g[None, :, None] + beta[None, :, None]
        return jnp.where(y > 0, y, NEG_SLOPE * y)

    h = bn_lrelu(conv1d(h, params['wc1'], params['bc1']), params['g1'], params['be1'])
    h = bn_lrelu(conv1d(h, params['wc2'], params['bc2']), params['g2'], params['be2'])
    h = bn_lrelu(conv1d(h, params['wc3'], params['bc3']), params['g3'], params['be3'])
    flat = h.reshape(B, -1)
    combined = jnp.concatenate([flat, emb], axis=1)
    hidden = combined @ params['w1'].T + params['b1']
    mu = jnp.mean(hidden, axis=-1, keepdims=True)
    var = jnp.mean((hidden - mu) ** 2, axis=-1, keepdims=True)
    y = (hidden - mu) * jax.lax.rsqrt(var + EPS) * params['ln_g'] + params['ln_b']
    y = jnp.where(y > 0, y, NEG_SLOPE * y)
    return y @ params['w2'].T + params['b2']


if __name__ == "__main__":
    B, seq_length, hidden_dim, num_classes = 2, 16, 32, 4
    key = jax.random.PRNGKey(0)
    kp, kx, kl = jax.random.split(key, 3)
    params = make_params(kp, seq_length, hidden_dim, num_classes)
    x = jax.random.normal(kx, (B, seq_length, 1), jnp.float32)
    # keep test inputs exactly representable in bf16 (kernel feeds the MXU in bf16)
    x = x.astype(jnp.bfloat16).astype(jnp.float32)
    labels = jax.random.randint(kl, (B,), 0, num_classes + 1, dtype=jnp.int32)

    out = jax.block_until_ready(forward_pallas(params, x, labels, hidden_dim))
    ref = jax.block_until_ready(forward_ref(params, x, labels, hidden_dim))
    assert out.shape == (B, 1), out.shape
    # bf16 MXU operands (f32 accumulation) vs pure-f32 reference -> slightly looser tol.
    if not bool(jnp.allclose(out, ref, atol=2e-2, rtol=2e-2)):
        raise AssertionError(f"kernel/reference mismatch:\n{out}\nvs\n{ref}")
    print("KERNEL_OK")
</pallas_src>

<mosaic_0001>
module attributes {stable_mosaic.version = 11 : i64} {
  func.func @kernel(%arg0: memref<8x4xf32, #tpu.memory_space<vmem>>, %arg1: memref<32x2xf32, #tpu.memory_space<vmem>>, %arg2: memref<8x5xbf16, #tpu.memory_space<vmem>>, %arg3: memref<8x1xf32, #tpu.memory_space<vmem>>, %arg4: memref<8x1xf32, #tpu.memory_space<vmem>>, %arg5: memref<8x1xf32, #tpu.memory_space<vmem>>, %arg6: memref<16x40xbf16, #tpu.memory_space<vmem>>, %arg7: memref<16x1xf32, #tpu.memory_space<vmem>>, %arg8: memref<16x1xf32, #tpu.memory_space<vmem>>, %arg9: memref<16x1xf32, #tpu.memory_space<vmem>>, %arg10: memref<32x80xbf16, #tpu.memory_space<vmem>>, %arg11: memref<32x1xf32, #tpu.memory_space<vmem>>, %arg12: memref<32x1xf32, #tpu.memory_space<vmem>>, %arg13: memref<32x1xf32, #tpu.memory_space<vmem>>, %arg14: memref<32x96xbf16, #tpu.memory_space<vmem>>, %arg15: memref<32x1xf32, #tpu.memory_space<vmem>>, %arg16: memref<32x1xf32, #tpu.memory_space<vmem>>, %arg17: memref<32x1xf32, #tpu.memory_space<vmem>>, %arg18: memref<1x32xf32, #tpu.memory_space<vmem>>, %arg19: memref<1x1xf32, #tpu.memory_space<vmem>>, %arg20: memref<1x2xf32, #tpu.memory_space<vmem>>, %arg21: memref<96x2xf32, #tpu.memory_space<vmem>>) attributes {dimension_semantics = [], scalar_prefetch = 0 : i64, scratch_operands = 1 : i64, tpu.core_type = #tpu.core_type<tc>} {
    %c0 = arith.constant 0 : index
    %c0_0 = arith.constant 0 : index
    %0 = vector.load %arg0[%c0, %c0_0] : memref<8x4xf32, #tpu.memory_space<vmem>>, vector<1x4xf32>
    %c1 = arith.constant 1 : index
    %c0_1 = arith.constant 0 : index
    %1 = vector.load %arg0[%c1, %c0_1] : memref<8x4xf32, #tpu.memory_space<vmem>>, vector<1x4xf32>
    %c2 = arith.constant 2 : index
    %c0_2 = arith.constant 0 : index
    %2 = vector.load %arg0[%c2, %c0_2] : memref<8x4xf32, #tpu.memory_space<vmem>>, vector<1x4xf32>
    %c3 = arith.constant 3 : index
    %c0_3 = arith.constant 0 : index
    %3 = vector.load %arg0[%c3, %c0_3] : memref<8x4xf32, #tpu.memory_space<vmem>>, vector<1x4xf32>
    %c4 = arith.constant 4 : index
    %c0_4 = arith.constant 0 : index
    %4 = vector.load %arg0[%c4, %c0_4] : memref<8x4xf32, #tpu.memory_space<vmem>>, vector<1x4xf32>
    %c5 = arith.constant 5 : index
    %c0_5 = arith.constant 0 : index
    %5 = vector.load %arg0[%c5, %c0_5] : memref<8x4xf32, #tpu.memory_space<vmem>>, vector<1x4xf32>
    %c6 = arith.constant 6 : index
    %c0_6 = arith.constant 0 : index
    %6 = vector.load %arg0[%c6, %c0_6] : memref<8x4xf32, #tpu.memory_space<vmem>>, vector<1x4xf32>
    %c7 = arith.constant 7 : index
    %c0_7 = arith.constant 0 : index
    %7 = vector.load %arg0[%c7, %c0_7] : memref<8x4xf32, #tpu.memory_space<vmem>>, vector<1x4xf32>
    %c0_8 = arith.constant 0 : index
    %c0_9 = arith.constant 0 : index
    %8 = vector.load %arg2[%c0_8, %c0_9] : memref<8x5xbf16, #tpu.memory_space<vmem>>, vector<8x5xbf16>
    %c0_10 = arith.constant 0 : index
    %c0_11 = arith.constant 0 : index
    %9 = vector.load %arg3[%c0_10, %c0_11] : memref<8x1xf32, #tpu.memory_space<vmem>>, vector<8x1xf32>
    %c0_12 = arith.constant 0 : index
    %c0_13 = arith.constant 0 : index
    %10 = vector.load %arg4[%c0_12, %c0_13] : memref<8x1xf32, #tpu.memory_space<vmem>>, vector<8x1xf32>
    %c0_14 = arith.constant 0 : index
    %c0_15 = arith.constant 0 : index
    %11 = vector.load %arg5[%c0_14, %c0_15] : memref<8x1xf32, #tpu.memory_space<vmem>>, vector<8x1xf32>
    %cst = arith.constant 0.000000e+00 : f32
    %12 = vector.broadcast %cst : f32 to vector<1x2xf32>
    %13 = vector.extract_strided_slice %6 {offsets = [0, 0], sizes = [1, 2], strides = [1, 1]} : vector<1x4xf32> to vector<1x2xf32>
    %14 = tpu.concatenate %12, %13 in 1 : vector<1x2xf32>, vector<1x2xf32> -> vector<1x4xf32>
    %cst_16 = arith.constant 0.000000e+00 : f32
    %15 = vector.broadcast %cst_16 : f32 to vector<1x2xf32>
    %16 = vector.extract_strided_slice %7 {offsets = [0, 0], sizes = [1, 2], strides = [1, 1]} : vector<1x4xf32> to vector<1x2xf32>
    %17 = tpu.concatenate %15, %16 in 1 : vector<1x2xf32>, vector<1x2xf32> -> vector<1x4xf32>
    %18 = tpu.concatenate %14, %17, %0, %1, %2 in 0 : vector<1x4xf32>, vector<1x4xf32>, vector<1x4xf32>, vector<1x4xf32>, vector<1x4xf32> -> vector<5x4xf32>
    %19 = arith.truncf %18 : vector<5x4xf32> to vector<5x4xbf16>
    %cst_17 = arith.constant dense<0.000000e+00> : vector<8x4xf32>
    %20 = tpu.matmul %8, %19, %cst_17 {dimension_numbers = #tpu.dot_dimension_numbers<[1], [0], [0], [1], [0, 0, 1, 1], [], []>} : vector<8x5xbf16>, vector<5x4xbf16>, vector<8x4xf32> -> vector<8x4xf32>
    %21 = vector.broadcast %9 : vector<8x1xf32> to vector<8x4xf32>
    %22 = arith.addf %20, %21 : vector<8x4xf32>
    %23 = tpu.concatenate %0, %1, %2, %3, %4 in 0 : vector<1x4xf32>, vector<1x4xf32>, vector<1x4xf32>, vector<1x4xf32>, vector<1x4xf32> -> vector<5x4xf32>
    %24 = arith.truncf %23 : vector<5x4xf32> to vector<5x4xbf16>
    %cst_18 = arith.constant dense<0.000000e+00> : vector<8x4xf32>
    %25 = tpu.matmul %8, %24, %cst_18 {dimension_numbers = #tpu.dot_dimension_numbers<[1], [0], [0], [1], [0, 0, 1, 1], [], []>} : vector<8x5xbf16>, vector<5x4xbf16>, vector<8x4xf32> -> vector<8x4xf32>
    %26 = vector.broadcast %9 : vector<8x1xf32> to vector<8x4xf32>
    %27 = arith.addf %25, %26 : vector<8x4xf32>
    %28 = tpu.concatenate %2, %3, %4, %5, %6 in 0 : vector<1x4xf32>, vector<1x4xf32>, vector<1x4xf32>, vector<1x4xf32>, vector<1x4xf32> -> vector<5x4xf32>
    %29 = arith.truncf %28 : vector<5x4xf32> to vector<5x4xbf16>
    %cst_19 = arith.constant dense<0.000000e+00> : vector<8x4xf32>
    %30 = tpu.matmul %8, %29, %cst_19 {dimension_numbers = #tpu.dot_dimension_numbers<[1], [0], [0], [1], [0, 0, 1, 1], [], []>} : vector<8x5xbf16>, vector<5x4xbf16>, vector<8x4xf32> -> vector<8x4xf32>
    %31 = vector.broadcast %9 : vector<8x1xf32> to vector<8x4xf32>
    %32 = arith.addf %30, %31 : vector<8x4xf32>
    %cst_20 = arith.constant 0.000000e+00 : f32
    %33 = vector.broadcast %cst_20 : f32 to vector<1x2xf32>
    %34 = vector.extract_strided_slice %0 {offsets = [0, 2], sizes = [1, 2], strides = [1, 1]} : vector<1x4xf32> to vector<1x2xf32>
    %35 = tpu.concatenate %34, %33 in 1 : vector<1x2xf32>, vector<1x2xf32> -> vector<1x4xf32>
    %36 = tpu.concatenate %4, %5, %6, %7, %35 in 0 : vector<1x4xf32>, vector<1x4xf32>, vector<1x4xf32>, vector<1x4xf32>, vector<1x4xf32> -> vector<5x4xf32>
    %37 = arith.truncf %36 : vector<5x4xf32> to vector<5x4xbf16>
    %cst_21 = arith.constant dense<0.000000e+00> : vector<8x4xf32>
    %38 = tpu.matmul %8, %37, %cst_21 {dimension_numbers = #tpu.dot_dimension_numbers<[1], [0], [0], [1], [0, 0, 1, 1], [], []>} : vector<8x5xbf16>, vector<5x4xbf16>, vector<8x4xf32> -> vector<8x4xf32>
    %39 = vector.broadcast %9 : vector<8x1xf32> to vector<8x4xf32>
    %40 = arith.addf %38, %39 : vector<8x4xf32>
    %cst_22 = arith.constant dense<0.000000e+00> : vector<8xf32>
    %41 = vector.multi_reduction <add>, %22, %cst_22 [1] : vector<8x4xf32> to vector<8xf32>
    %42 = vector.shape_cast %41 : vector<8xf32> to vector<8x1xf32>
    %cst_23 = arith.constant 0.000000e+00 : f32
    %43 = vector.broadcast %cst_23 : f32 to vector<8x1xf32>
    %44 = arith.addf %43, %42 : vector<8x1xf32>
    %cst_24 = arith.constant dense<0.000000e+00> : vector<8xf32>
    %45 = vector.multi_reduction <add>, %27, %cst_24 [1] : vector<8x4xf32> to vector<8xf32>
    %46 = vector.shape_cast %45 : vector<8xf32> to vector<8x1xf32>
    %47 = arith.addf %44, %46 : vector<8x1xf32>
    %cst_25 = arith.constant dense<0.000000e+00> : vector<8xf32>
    %48 = vector.multi_reduction <add>, %32, %cst_25 [1] : vector<8x4xf32> to vector<8xf32>
    %49 = vector.shape_cast %48 : vector<8xf32> to vector<8x1xf32>
    %50 = arith.addf %47, %49 : vector<8x1xf32>
    %cst_26 = arith.constant dense<0.000000e+00> : vector<8xf32>
    %51 = vector.multi_reduction <add>, %40, %cst_26 [1] : vector<8x4xf32> to vector<8xf32>
    %52 = vector.shape_cast %51 : vector<8xf32> to vector<8x1xf32>
    %53 = arith.addf %50, %52 : vector<8x1xf32>
    %54 = arith.mulf %22, %22 : vector<8x4xf32>
    %cst_27 = arith.constant dense<0.000000e+00> : vector<8xf32>
    %55 = vector.multi_reduction <add>, %54, %cst_27 [1] : vector<8x4xf32> to vector<8xf32>
    %56 = vector.shape_cast %55 : vector<8xf32> to vector<8x1xf32>
    %cst_28 = arith.constant 0.000000e+00 : f32
    %57 = vector.broadcast %cst_28 : f32 to vector<8x1xf32>
    %58 = arith.addf %57, %56 : vector<8x1xf32>
    %59 = arith.mulf %27, %27 : vector<8x4xf32>
    %cst_29 = arith.constant dense<0.000000e+00> : vector<8xf32>
    %60 = vector.multi_reduction <add>, %59, %cst_29 [1] : vector<8x4xf32> to vector<8xf32>
    %61 = vector.shape_cast %60 : vector<8xf32> to vector<8x1xf32>
    %62 = arith.addf %58, %61 : vector<8x1xf32>
    %63 = arith.mulf %32, %32 : vector<8x4xf32>
    %cst_30 = arith.constant dense<0.000000e+00> : vector<8xf32>
    %64 = vector.multi_reduction <add>, %63, %cst_30 [1] : vector<8x4xf32> to vector<8xf32>
    %65 = vector.shape_cast %64 : vector<8xf32> to vector<8x1xf32>
    %66 = arith.addf %62, %65 : vector<8x1xf32>
    %67 = arith.mulf %40, %40 : vector<8x4xf32>
    %cst_31 = arith.constant dense<0.000000e+00> : vector<8xf32>
    %68 = vector.multi_reduction <add>, %67, %cst_31 [1] : vector<8x4xf32> to vector<8xf32>
    %69 = vector.shape_cast %68 : vector<8xf32> to vector<8x1xf32>
    %70 = arith.addf %66, %69 : vector<8x1xf32>
    %cst_32 = arith.constant 1.600000e+01 : f32
    %71 = vector.broadcast %cst_32 : f32 to vector<8x1xf32>
    %72 = arith.divf %53, %71 : vector<8x1xf32>
    %cst_33 = arith.constant 1.600000e+01 : f32
    %73 = vector.broadcast %cst_33 : f32 to vector<8x1xf32>
    %74 = arith.divf %70, %73 : vector<8x1xf32>
    %75 = arith.mulf %72, %72 : vector<8x1xf32>
    %76 = arith.subf %74, %75 : vector<8x1xf32>
    %cst_34 = arith.constant 0.000000e+00 : f32
    %77 = vector.broadcast %cst_34 : f32 to vector<8x1xf32>
    %78 = arith.maximumf %76, %77 : vector<8x1xf32>
    %cst_35 = arith.constant 9.99999974E-6 : f32
    %79 = vector.broadcast %cst_35 : f32 to vector<8x1xf32>
    %80 = arith.addf %78, %79 : vector<8x1xf32>
    %81 = math.rsqrt %80 : vector<8x1xf32>
    %82 = arith.mulf %81, %10 : vector<8x1xf32>
    %83 = arith.mulf %72, %82 : vector<8x1xf32>
    %84 = arith.subf %11, %83 : vector<8x1xf32>
    %85 = vector.broadcast %82 : vector<8x1xf32> to vector<8x4xf32>
    %86 = arith.mulf %22, %85 : vector<8x4xf32>
    %87 = vector.broadcast %84 : vector<8x1xf32> to vector<8x4xf32>
    %88 = arith.addf %86, %87 : vector<8x4xf32>
    %cst_36 = arith.constant 0.000000e+00 : f32
    %89 = vector.broadcast %cst_36 : f32 to vector<8x4xf32>
    %90 = arith.cmpf ogt, %88, %89 : vector<8x4xf32>
    %cst_37 = arith.constant 2.000000e-01 : f32
    %91 = vector.broadcast %cst_37 : f32 to vector<8x4xf32>
    %92 = arith.mulf %91, %88 : vector<8x4xf32>
    %93 = arith.select %90, %88, %92 : vector<8x4xi1>, vector<8x4xf32>
    %94 = vector.broadcast %82 : vector<8x1xf32> to vector<8x4xf32>
    %95 = arith.mulf %27, %94 : vector<8x4xf32>
    %96 = vector.broadcast %84 : vector<8x1xf32> to vector<8x4xf32>
    %97 = arith.addf %95, %96 : vector<8x4xf32>
    %cst_38 = arith.constant 0.000000e+00 : f32
    %98 = vector.broadcast %cst_38 : f32 to vector<8x4xf32>
    %99 = arith.cmpf ogt, %97, %98 : vector<8x4xf32>
    %cst_39 = arith.constant 2.000000e-01 : f32
    %100 = vector.broadcast %cst_39 : f32 to vector<8x4xf32>
    %101 = arith.mulf %100, %97 : vector<8x4xf32>
    %102 = arith.select %99, %97, %101 : vector<8x4xi1>, vector<8x4xf32>
    %103 = vector.broadcast %82 : vector<8x1xf32> to vector<8x4xf32>
    %104 = arith.mulf %32, %103 : vector<8x4xf32>
    %105 = vector.broadcast %84 : vector<8x1xf32> to vector<8x4xf32>
    %106 = arith.addf %104, %105 : vector<8x4xf32>
    %cst_40 = arith.constant 0.000000e+00 : f32
    %107 = vector.broadcast %cst_40 : f32 to vector<8x4xf32>
    %108 = arith.cmpf ogt, %106, %107 : vector<8x4xf32>
    %cst_41 = arith.constant 2.000000e-01 : f32
    %109 = vector.broadcast %cst_41 : f32 to vector<8x4xf32>
    %110 = arith.mulf %109, %106 : vector<8x4xf32>
    %111 = arith.select %108, %106, %110 : vector<8x4xi1>, vector<8x4xf32>
    %112 = vector.broadcast %82 : vector<8x1xf32> to vector<8x4xf32>
    %113 = arith.mulf %40, %112 : vector<8x4xf32>
    %114 = vector.broadcast %84 : vector<8x1xf32> to vector<8x4xf32>
    %115 = arith.addf %113, %114 : vector<8x4xf32>
    %cst_42 = arith.constant 0.000000e+00 : f32
    %116 = vector.broadcast %cst_42 : f32 to vector<8x4xf32>
    %117 = arith.cmpf ogt, %115, %116 : vector<8x4xf32>
    %cst_43 = arith.constant 2.000000e-01 : f32
    %118 = vector.broadcast %cst_43 : f32 to vector<8x4xf32>
    %119 = arith.mulf %118, %115 : vector<8x4xf32>
    %120 = arith.select %117, %115, %119 : vector<8x4xi1>, vector<8x4xf32>
    %c0_44 = arith.constant 0 : index
    %c0_45 = arith.constant 0 : index
    %121 = vector.load %arg6[%c0_44, %c0_45] : memref<16x40xbf16, #tpu.memory_space<vmem>>, vector<16x40xbf16>
    %c0_46 = arith.constant 0 : index
    %c0_47 = arith.constant 0 : index
    %122 = vector.load %arg7[%c0_46, %c0_47] : memref<16x1xf32, #tpu.memory_space<vmem>>, vector<16x1xf32>
    %c0_48 = arith.constant 0 : index
    %c0_49 = arith.constant 0 : index
    %123 = vector.load %arg8[%c0_48, %c0_49] : memref<16x1xf32, #tpu.memory_space<vmem>>, vector<16x1xf32>
    %c0_50 = arith.constant 0 : index
    %c0_51 = arith.constant 0 : index
    %124 = vector.load %arg9[%c0_50, %c0_51] : memref<16x1xf32, #tpu.memory_space<vmem>>, vector<16x1xf32>
    %cst_52 = arith.constant 0.000000e+00 : f32
    %125 = vector.broadcast %cst_52 : f32 to vector<8x2xf32>
    %126 = vector.extract_strided_slice %111 {offsets = [0, 0], sizes = [8, 2], strides = [1, 1]} : vector<8x4xf32> to vector<8x2xf32>
    %127 = tpu.concatenate %125, %126 in 1 : vector<8x2xf32>, vector<8x2xf32> -> vector<8x4xf32>
    %cst_53 = arith.constant 0.000000e+00 : f32
    %128 = vector.broadcast %cst_53 : f32 to vector<8x2xf32>
    %129 = vector.extract_strided_slice %120 {offsets = [0, 0], sizes = [8, 2], strides = [1, 1]} : vector<8x4xf32> to vector<8x2xf32>
    %130 = tpu.concatenate %128, %129 in 1 : vector<8x2xf32>, vector<8x2xf32> -> vector<8x4xf32>
    %131 = tpu.concatenate %127, %130, %93, %102, %111 in 0 : vector<8x4xf32>, vector<8x4xf32>, vector<8x4xf32>, vector<8x4xf32>, vector<8x4xf32> -> vector<40x4xf32>
    %132 = arith.truncf %131 : vector<40x4xf32> to vector<40x4xbf16>
    %cst_54 = arith.constant dense<0.000000e+00> : vector<16x4xf32>
    %133 = tpu.matmul %121, %132, %cst_54 {dimension_numbers = #tpu.dot_dimension_numbers<[1], [0], [0], [1], [0, 0, 1, 1], [], []>} : vector<16x40xbf16>, vector<40x4xbf16>, vector<16x4xf32> -> vector<16x4xf32>
    %134 = vector.broadcast %122 : vector<16x1xf32> to vector<16x4xf32>
    %135 = arith.addf %133, %134 : vector<16x4xf32>
    %cst_55 = arith.constant 0.000000e+00 : f32
    %136 = vector.broadcast %cst_55 : f32 to vector<8x2xf32>
    %137 = vector.extract_strided_slice %93 {offsets = [0, 2], sizes = [8, 2], strides = [1, 1]} : vector<8x4xf32> to vector<8x2xf32>
    %138 = tpu.concatenate %137, %136 in 1 : vector<8x2xf32>, vector<8x2xf32> -> vector<8x4xf32>
    %139 = tpu.concatenate %93, %102, %111, %120, %138 in 0 : vector<8x4xf32>, vector<8x4xf32>, vector<8x4xf32>, vector<8x4xf32>, vector<8x4xf32> -> vector<40x4xf32>
    %140 = arith.truncf %139 : vector<40x4xf32> to vector<40x4xbf16>
    %cst_56 = arith.constant dense<0.000000e+00> : vector<16x4xf32>
    %141 = tpu.matmul %121, %140, %cst_56 {dimension_numbers = #tpu.dot_dimension_numbers<[1], [0], [0], [1], [0, 0, 1, 1], [], []>} : vector<16x40xbf16>, vector<40x4xbf16>, vector<16x4xf32> -> vector<16x4xf32>
    %142 = vector.broadcast %122 : vector<16x1xf32> to vector<16x4xf32>
    %143 = arith.addf %141, %142 : vector<16x4xf32>
    %cst_57 = arith.constant dense<0.000000e+00> : vector<16xf32>
    %144 = vector.multi_reduction <add>, %135, %cst_57 [1] : vector<16x4xf32> to vector<16xf32>
    %145 = vector.shape_cast %144 : vector<16xf32> to vector<16x1xf32>
    %cst_58 = arith.constant 0.000000e+00 : f32
    %146 = vector.broadcast %cst_58 : f32 to vector<16x1xf32>
    %147 = arith.addf %146, %145 : vector<16x1xf32>
    %cst_59 = arith.constant dense<0.000000e+00> : vector<16xf32>
    %148 = vector.multi_reduction <add>, %143, %cst_59 [1] : vector<16x4xf32> to vector<16xf32>
    %149 = vector.shape_cast %148 : vector<16xf32> to vector<16x1xf32>
    %150 = arith.addf %147, %149 : vector<16x1xf32>
    %151 = arith.mulf %135, %135 : vector<16x4xf32>
    %cst_60 = arith.constant dense<0.000000e+00> : vector<16xf32>
    %152 = vector.multi_reduction <add>, %151, %cst_60 [1] : vector<16x4xf32> to vector<16xf32>
    %153 = vector.shape_cast %152 : vector<16xf32> to vector<16x1xf32>
    %cst_61 = arith.constant 0.000000e+00 : f32
    %154 = vector.broadcast %cst_61 : f32 to vector<16x1xf32>
    %155 = arith.addf %154, %153 : vector<16x1xf32>
    %156 = arith.mulf %143, %143 : vector<16x4xf32>
    %cst_62 = arith.constant dense<0.000000e+00> : vector<16xf32>
    %157 = vector.multi_reduction <add>, %156, %cst_62 [1] : vector<16x4xf32> to vector<16xf32>
    %158 = vector.shape_cast %157 : vector<16xf32> to vector<16x1xf32>
    %159 = arith.addf %155, %158 : vector<16x1xf32>
    %cst_63 = arith.constant 8.000000e+00 : f32
    %160 = vector.broadcast %cst_63 : f32 to vector<16x1xf32>
    %161 = arith.divf %150, %160 : vector<16x1xf32>
    %cst_64 = arith.constant 8.000000e+00 : f32
    %162 = vector.broadcast %cst_64 : f32 to vector<16x1xf32>
    %163 = arith.divf %159, %162 : vector<16x1xf32>
    %164 = arith.mulf %161, %161 : vector<16x1xf32>
    %165 = arith.subf %163, %164 : vector<16x1xf32>
    %cst_65 = arith.constant 0.000000e+00 : f32
    %166 = vector.broadcast %cst_65 : f32 to vector<16x1xf32>
    %167 = arith.maximumf %165, %166 : vector<16x1xf32>
    %cst_66 = arith.constant 9.99999974E-6 : f32
    %168 = vector.broadcast %cst_66 : f32 to vector<16x1xf32>
    %169 = arith.addf %167, %168 : vector<16x1xf32>
    %170 = math.rsqrt %169 : vector<16x1xf32>
    %171 = arith.mulf %170, %123 : vector<16x1xf32>
    %172 = arith.mulf %161, %171 : vector<16x1xf32>
    %173 = arith.subf %124, %172 : vector<16x1xf32>
    %174 = vector.broadcast %171 : vector<16x1xf32> to vector<16x4xf32>
    %175 = arith.mulf %135, %174 : vector<16x4xf32>
    %176 = vector.broadcast %173 : vector<16x1xf32> to vector<16x4xf32>
    %177 = arith.addf %175, %176 : vector<16x4xf32>
    %cst_67 = arith.constant 0.000000e+00 : f32
    %178 = vector.broadcast %cst_67 : f32 to vector<16x4xf32>
    %179 = arith.cmpf ogt, %177, %178 : vector<16x4xf32>
    %cst_68 = arith.constant 2.000000e-01 : f32
    %180 = vector.broadcast %cst_68 : f32 to vector<16x4xf32>
    %181 = arith.mulf %180, %177 : vector<16x4xf32>
    %182 = arith.select %179, %177, %181 : vector<16x4xi1>, vector<16x4xf32>
    %183 = vector.broadcast %171 : vector<16x1xf32> to vector<16x4xf32>
    %184 = arith.mulf %143, %183 : vector<16x4xf32>
    %185 = vector.broadcast %173 : vector<16x1xf32> to vector<16x4xf32>
    %186 = arith.addf %184, %185 : vector<16x4xf32>
    %cst_69 = arith.constant 0.000000e+00 : f32
    %187 = vector.broadcast %cst_69 : f32 to vector<16x4xf32>
    %188 = arith.cmpf ogt, %186, %187 : vector<16x4xf32>
    %cst_70 = arith.constant 2.000000e-01 : f32
    %189 = vector.broadcast %cst_70 : f32 to vector<16x4xf32>
    %190 = arith.mulf %189, %186 : vector<16x4xf32>
    %191 = arith.select %188, %186, %190 : vector<16x4xi1>, vector<16x4xf32>
    %c0_71 = arith.constant 0 : index
    %c0_72 = arith.constant 0 : index
    %192 = vector.load %arg10[%c0_71, %c0_72] : memref<32x80xbf16, #tpu.memory_space<vmem>>, vector<32x80xbf16>
    %c0_73 = arith.constant 0 : index
    %c0_74 = arith.constant 0 : index
    %193 = vector.load %arg11[%c0_73, %c0_74] : memref<32x1xf32, #tpu.memory_space<vmem>>, vector<32x1xf32>
    %c0_75 = arith.constant 0 : index
    %c0_76 = arith.constant 0 : index
    %194 = vector.load %arg12[%c0_75, %c0_76] : memref<32x1xf32, #tpu.memory_space<vmem>>, vector<32x1xf32>
    %c0_77 = arith.constant 0 : index
    %c0_78 = arith.constant 0 : index
    %195 = vector.load %arg13[%c0_77, %c0_78] : memref<32x1xf32, #tpu.memory_space<vmem>>, vector<32x1xf32>
    %cst_79 = arith.constant 0.000000e+00 : f32
    %196 = vector.broadcast %cst_79 : f32 to vector<16x2xf32>
    %197 = vector.extract_strided_slice %182 {offsets = [0, 0], sizes = [16, 2], strides = [1, 1]} : vector<16x4xf32> to vector<16x2xf32>
    %198 = tpu.concatenate %196, %197 in 1 : vector<16x2xf32>, vector<16x2xf32> -> vector<16x4xf32>
    %cst_80 = arith.constant 0.000000e+00 : f32
    %199 = vector.broadcast %cst_80 : f32 to vector<16x2xf32>
    %200 = vector.extract_strided_slice %191 {offsets = [0, 0], sizes = [16, 2], strides = [1, 1]} : vector<16x4xf32> to vector<16x2xf32>
    %201 = tpu.concatenate %199, %200 in 1 : vector<16x2xf32>, vector<16x2xf32> -> vector<16x4xf32>
    %cst_81 = arith.constant 0.000000e+00 : f32
    %202 = vector.broadcast %cst_81 : f32 to vector<16x2xf32>
    %203 = vector.extract_strided_slice %182 {offsets = [0, 2], sizes = [16, 2], strides = [1, 1]} : vector<16x4xf32> to vector<16x2xf32>
    %204 = tpu.concatenate %203, %202 in 1 : vector<16x2xf32>, vector<16x2xf32> -> vector<16x4xf32>
    %205 = tpu.concatenate %198, %201, %182, %191, %204 in 0 : vector<16x4xf32>, vector<16x4xf32>, vector<16x4xf32>, vector<16x4xf32>, vector<16x4xf32> -> vector<80x4xf32>
    %206 = arith.truncf %205 : vector<80x4xf32> to vector<80x4xbf16>
    %cst_82 = arith.constant dense<0.000000e+00> : vector<32x4xf32>
    %207 = tpu.matmul %192, %206, %cst_82 {dimension_numbers = #tpu.dot_dimension_numbers<[1], [0], [0], [1], [0, 0, 1, 1], [], []>} : vector<32x80xbf16>, vector<80x4xbf16>, vector<32x4xf32> -> vector<32x4xf32>
    %208 = vector.broadcast %193 : vector<32x1xf32> to vector<32x4xf32>
    %209 = arith.addf %207, %208 : vector<32x4xf32>
    %cst_83 = arith.constant dense<0.000000e+00> : vector<32xf32>
    %210 = vector.multi_reduction <add>, %209, %cst_83 [1] : vector<32x4xf32> to vector<32xf32>
    %211 = vector.shape_cast %210 : vector<32xf32> to vector<32x1xf32>
    %cst_84 = arith.constant 0.000000e+00 : f32
    %212 = vector.broadcast %cst_84 : f32 to vector<32x1xf32>
    %213 = arith.addf %212, %211 : vector<32x1xf32>
    %214 = arith.mulf %209, %209 : vector<32x4xf32>
    %cst_85 = arith.constant dense<0.000000e+00> : vector<32xf32>
    %215 = vector.multi_reduction <add>, %214, %cst_85 [1] : vector<32x4xf32> to vector<32xf32>
    %216 = vector.shape_cast %215 : vector<32xf32> to vector<32x1xf32>
    %cst_86 = arith.constant 0.000000e+00 : f32
    %217 = vector.broadcast %cst_86 : f32 to vector<32x1xf32>
    %218 = arith.addf %217, %216 : vector<32x1xf32>
    %cst_87 = arith.constant 4.000000e+00 : f32
    %219 = vector.broadcast %cst_87 : f32 to vector<32x1xf32>
    %220 = arith.divf %213, %219 : vector<32x1xf32>
    %cst_88 = arith.constant 4.000000e+00 : f32
    %221 = vector.broadcast %cst_88 : f32 to vector<32x1xf32>
    %222 = arith.divf %218, %221 : vector<32x1xf32>
    %223 = arith.mulf %220, %220 : vector<32x1xf32>
    %224 = arith.subf %222, %223 : vector<32x1xf32>
    %cst_89 = arith.constant 0.000000e+00 : f32
    %225 = vector.broadcast %cst_89 : f32 to vector<32x1xf32>
    %226 = arith.maximumf %224, %225 : vector<32x1xf32>
    %cst_90 = arith.constant 9.99999974E-6 : f32
    %227 = vector.broadcast %cst_90 : f32 to vector<32x1xf32>
    %228 = arith.addf %226, %227 : vector<32x1xf32>
    %229 = math.rsqrt %228 : vector<32x1xf32>
    %230 = arith.mulf %229, %194 : vector<32x1xf32>
    %231 = arith.mulf %220, %230 : vector<32x1xf32>
    %232 = arith.subf %195, %231 : vector<32x1xf32>
    %233 = vector.broadcast %230 : vector<32x1xf32> to vector<32x4xf32>
    %234 = arith.mulf %209, %233 : vector<32x4xf32>
    %235 = vector.broadcast %232 : vector<32x1xf32> to vector<32x4xf32>
    %236 = arith.addf %234, %235 : vector<32x4xf32>
    %cst_91 = arith.constant 0.000000e+00 : f32
    %237 = vector.broadcast %cst_91 : f32 to vector<32x4xf32>
    %238 = arith.cmpf ogt, %236, %237 : vector<32x4xf32>
    %cst_92 = arith.constant 2.000000e-01 : f32
    %239 = vector.broadcast %cst_92 : f32 to vector<32x4xf32>
    %240 = arith.mulf %239, %236 : vector<32x4xf32>
    %241 = arith.select %238, %236, %240 : vector<32x4xi1>, vector<32x4xf32>
    %242 = vector.extract_strided_slice %241 {offsets = [0, 0], sizes = [32, 2], strides = [1, 1]} : vector<32x4xf32> to vector<32x2xf32>
    %c0_93 = arith.constant 0 : index
    %c0_94 = arith.constant 0 : index
    %243 = vector.load %arg21[%c0_93, %c0_94] : memref<96x2xf32, #tpu.memory_space<vmem>>, vector<32x2xf32>
    tpu.vector_store %arg21[%c0_93, %c0_94], %242 {strides = array<i32>} : memref<96x2xf32, #tpu.memory_space<vmem>>, vector<32x2xf32>,
    %244 = vector.extract_strided_slice %241 {offsets = [0, 2], sizes = [32, 2], strides = [1, 1]} : vector<32x4xf32> to vector<32x2xf32>
    %c32 = arith.constant 32 : index
    %c0_95 = arith.constant 0 : index
    %245 = vector.load %arg21[%c32, %c0_95] : memref<96x2xf32, #tpu.memory_space<vmem>>, vector<32x2xf32>
    tpu.vector_store %arg21[%c32, %c0_95], %244 {strides = array<i32>} : memref<96x2xf32, #tpu.memory_space<vmem>>, vector<32x2xf32>,
    %c0_96 = arith.constant 0 : index
    %c0_97 = arith.constant 0 : index
    %246 = vector.load %arg1[%c0_96, %c0_97] : memref<32x2xf32, #tpu.memory_space<vmem>>, vector<32x2xf32>
    %c64 = arith.constant 64 : index
    %c0_98 = arith.constant 0 : index
    %247 = vector.load %arg21[%c64, %c0_98] : memref<96x2xf32, #tpu.memory_space<vmem>>, vector<32x2xf32>
    tpu.vector_store %arg21[%c64, %c0_98], %246 {strides = array<i32>} : memref<96x2xf32, #tpu.memory_space<vmem>>, vector<32x2xf32>,
    %c0_99 = arith.constant 0 : index
    %c0_100 = arith.constant 0 : index
    %248 = vector.load %arg14[%c0_99, %c0_100] : memref<32x96xbf16, #tpu.memory_space<vmem>>, vector<32x96xbf16>
    %c0_101 = arith.constant 0 : index
    %c0_102 = arith.constant 0 : index
    %249 = vector.load %arg21[%c0_101, %c0_102] : memref<96x2xf32, #tpu.memory_space<vmem>>, vector<96x2xf32>
    %250 = arith.truncf %249 : vector<96x2xf32> to vector<96x2xbf16>
    %cst_103 = arith.constant dense<0.000000e+00> : vector<32x2xf32>
    %251 = tpu.matmul %248, %250, %cst_103 {dimension_numbers = #tpu.dot_dimension_numbers<[1], [0], [0], [1], [0, 0, 1, 1], [], []>} : vector<32x96xbf16>, vector<96x2xbf16>, vector<32x2xf32> -> vector<32x2xf32>
    %c0_104 = arith.constant 0 : index
    %c0_105 = arith.constant 0 : index
    %252 = vector.load %arg15[%c0_104, %c0_105] : memref<32x1xf32, #tpu.memory_space<vmem>>, vector<32x1xf32>
    %253 = vector.broadcast %252 : vector<32x1xf32> to vector<32x2xf32>
    %254 = arith.addf %251, %253 : vector<32x2xf32>
    %cst_106 = arith.constant dense<0.000000e+00> : vector<2xf32>
    %255 = vector.multi_reduction <add>, %254, %cst_106 [0] : vector<32x2xf32> to vector<2xf32>
    %256 = vector.shape_cast %255 : vector<2xf32> to vector<1x2xf32>
    %cst_107 = arith.constant 3.200000e+01 : f32
    %257 = vector.broadcast %cst_107 : f32 to vector<1x2xf32>
    %258 = arith.divf %256, %257 : vector<1x2xf32>
    %259 = vector.broadcast %258 : vector<1x2xf32> to vector<32x2xf32>
    %260 = arith.subf %254, %259 : vector<32x2xf32>
    %261 = arith.mulf %260, %260 : vector<32x2xf32>
    %cst_108 = arith.constant dense<0.000000e+00> : vector<2xf32>
    %262 = vector.multi_reduction <add>, %261, %cst_108 [0] : vector<32x2xf32> to vector<2xf32>
    %263 = vector.shape_cast %262 : vector<2xf32> to vector<1x2xf32>
    %cst_109 = arith.constant 3.200000e+01 : f32
    %264 = vector.broadcast %cst_109 : f32 to vector<1x2xf32>
    %265 = arith.divf %263, %264 : vector<1x2xf32>
    %266 = vector.broadcast %258 : vector<1x2xf32> to vector<32x2xf32>
    %267 = arith.subf %254, %266 : vector<32x2xf32>
    %cst_110 = arith.constant 9.99999974E-6 : f32
    %268 = vector.broadcast %cst_110 : f32 to vector<1x2xf32>
    %269 = arith.addf %265, %268 : vector<1x2xf32>
    %270 = math.rsqrt %269 : vector<1x2xf32>
    %271 = vector.broadcast %270 : vector<1x2xf32> to vector<32x2xf32>
    %272 = arith.mulf %267, %271 : vector<32x2xf32>
    %c0_111 = arith.constant 0 : index
    %c0_112 = arith.constant 0 : index
    %273 = vector.load %arg16[%c0_111, %c0_112] : memref<32x1xf32, #tpu.memory_space<vmem>>, vector<32x1xf32>
    %274 = vector.broadcast %273 : vector<32x1xf32> to vector<32x2xf32>
    %275 = arith.mulf %272, %274 : vector<32x2xf32>
    %c0_113 = arith.constant 0 : index
    %c0_114 = arith.constant 0 : index
    %276 = vector.load %arg17[%c0_113, %c0_114] : memref<32x1xf32, #tpu.memory_space<vmem>>, vector<32x1xf32>
    %277 = vector.broadcast %276 : vector<32x1xf32> to vector<32x2xf32>
    %278 = arith.addf %275, %277 : vector<32x2xf32>
    %cst_115 = arith.constant 0.000000e+00 : f32
    %279 = vector.broadcast %cst_115 : f32 to vector<32x2xf32>
    %280 = arith.cmpf ogt, %278, %279 : vector<32x2xf32>
    %cst_116 = arith.constant 2.000000e-01 : f32
    %281 = vector.broadcast %cst_116 : f32 to vector<32x2xf32>
    %282 = arith.mulf %281, %278 : vector<32x2xf32>
    %283 = arith.select %280, %278, %282 : vector<32x2xi1>, vector<32x2xf32>
    %c0_117 = arith.constant 0 : index
    %c0_118 = arith.constant 0 : index
    %284 = vector.load %arg18[%c0_117, %c0_118] : memref<1x32xf32, #tpu.memory_space<vmem>>, vector<1x32xf32>
    %cst_119 = arith.constant dense<0.000000e+00> : vector<1x2xf32>
    %285 = tpu.matmul %284, %283, %cst_119 {dimension_numbers = #tpu.dot_dimension_numbers<[1], [0], [0], [1], [0, 0, 1, 1], [], []>} : vector<1x32xf32>, vector<32x2xf32>, vector<1x2xf32> -> vector<1x2xf32>
    %c0_120 = arith.constant 0 : index
    %c0_121 = arith.constant 0 : index
    %286 = vector.load %arg19[%c0_120, %c0_121] : memref<1x1xf32, #tpu.memory_space<vmem>>, vector<1x1xf32>
    %287 = vector.broadcast %286 : vector<1x1xf32> to vector<1x2xf32>
    %288 = arith.addf %285, %287 : vector<1x2xf32>
    %c0_122 = arith.constant 0 : index
    %c0_123 = arith.constant 0 : index
    %289 = vector.load %arg20[%c0_122, %c0_123] : memref<1x2xf32, #tpu.memory_space<vmem>>, vector<1x2xf32>
    tpu.vector_store %arg20[%c0_122, %c0_123], %288 {strides = array<i32>} : memref<1x2xf32, #tpu.memory_space<vmem>>, vector<1x2xf32>,
    return
  }
}

</mosaic_0001>

<bundles_post_ra>
// kernel: tpu_custom_call.1
= control target key start
LH: loop header
LB: loop body
LE: loop exit
PB: predicated region body
PF: predicated region fallthrough
CT: control target
= control target key end

     0   :  { %s1718_s0 = inlined_call_operand.vmem [shape: f32[8,4], index: 0, kind: input, shape index: {}]   ;;  %s1719_s1 = inlined_call_operand.vmem [shape: f32[32,2], index: 1, kind: input, shape index: {}]   ;;  %s1720_s2 = inlined_call_operand.vmem [shape: bf16[8,5], index: 2, kind: input, shape index: {}]   ;;  %s1721_s3 = inlined_call_operand.vmem [shape: f32[8,1], index: 3, kind: input, shape index: {}]   ;;  %s1722_s4 = inlined_call_operand.vmem [shape: f32[8,1], index: 4, kind: input, shape index: {}]   ;;  %s1723_s5 = inlined_call_operand.vmem [shape: f32[8,1], index: 5, kind: input, shape index: {}]   ;;  %s1724_s6 = inlined_call_operand.vmem [shape: bf16[16,40], index: 6, kind: input, shape index: {}]   ;;  %s1725_s7 = inlined_call_operand.vmem [shape: f32[16,1], index: 7, kind: input, shape index: {}]   ;;  %s1726_s8 = inlined_call_operand.vmem [shape: f32[16,1], index: 8, kind: input, shape index: {}]   ;;  %s1727_s9 = inlined_call_operand.vmem [shape: f32[16,1], index: 9, kind: input, shape index: {}]   ;;  %s1728_s10 = inlined_call_operand.vmem [shape: bf16[32,80], index: 10, kind: input, shape index: {}]   ;;  %s1729_s11 = inlined_call_operand.vmem [shape: f32[32,1], index: 11, kind: input, shape index: {}]   ;;  %s1730_s12 = inlined_call_operand.vmem [shape: f32[32,1], index: 12, kind: input, shape index: {}]   ;;  %s1731_s13 = inlined_call_operand.vmem [shape: f32[32,1], index: 13, kind: input, shape index: {}]   ;;  %s1732_s14 = inlined_call_operand.vmem [shape: bf16[32,96], index: 14, kind: input, shape index: {}]   ;;  %s1733_s15 = inlined_call_operand.vmem [shape: f32[32,1], index: 15, kind: input, shape index: {}]   ;;  %s1734_s16 = inlined_call_operand.vmem [shape: f32[32,1], index: 16, kind: input, shape index: {}]   ;;  %s1735_s17 = inlined_call_operand.vmem [shape: f32[32,1], index: 17, kind: input, shape index: {}]   ;;  %s1736_s18 = inlined_call_operand.vmem [shape: f32[1,32], index: 18, kind: input, shape index: {}]   ;;  %s1737_s19 = inlined_call_operand.<no memory space> [shape: f32[1,1], index: 19, kind: input, shape index: {}]   ;;  %s1738_s20 = inlined_call_operand.hbm [shape: f32[1,2], index: 20, kind: output, shape index: {}]  }
   0x1   :  { %1741 = sst [smem:[#allocation7_spill]] %s1718_s0  ;;  %v25_v0 = vstv %s1737_s19 }
   0x2   :  { %1742 = sst [smem:[#allocation8_spill]] %s1719_s1  ;;  %26 = vst [vmem:[#allocation3] sm:$0x1] %v25_v0 }
   0x3   :  { %1743 = sst [smem:[#allocation9_spill]] %s1720_s2 }
   0x4   :  { %1744 = sst [smem:[#allocation10_spill]] %s1721_s3 }
   0x5   :  { %1745 = sst [smem:[#allocation11_spill]] %s1722_s4 }
   0x6   :  { %s1746_s2 = sld [smem:[#allocation7_spill]]  ;;  %vm104_vm0 = vcmask 1040384   ;;  %vm106_vm1 = vcmask 1041408   ;;  %s1245_s30 = smov 2   ;;  %vm108_vm2 = vcmask 1042432   ;;  %vm110_vm3 = vcmask 1043456  }
   0x7   :  { %v1246_v14 = vmov 65535  }
   0x8   :  { %v122_v15 = vsel %vm106_vm1, 4294967295, %v1246_v14 }
   0xc   :  { %v75_v1 = vld [vmem:[%s1746_s2 + $0x6] sm:$0x1]  ;;  %v76_v2 = vld [vmem:[%s1746_s2 + $0x7] sm:$0x1]  ;;  %v1371_v4 = vld [vmem:[%s1746_s2] sm:$0x1] }
   0xd   :  { %v1167_v3 = vpack.i.bf16 %v75_v1, %v76_v2  ;;  %v1376_v5 = vld [vmem:[%s1746_s2 + $0x1] sm:$0x1]  ;;  %v1381_v6 = vld [vmem:[%s1746_s2 + $0x2] sm:$0x1]  ;;  %v72_v9 = vld [vmem:[%s1746_s2 + $0x3] sm:$0x1] }
   0xe   :  { %v140_v7 = vrot.slane %v1376_v5, 7  ;;  %v142_v8 = vrot.slane %v1381_v6, 6  ;;  %v73_v10 = vld [vmem:[%s1746_s2 + $0x4] sm:$0x1]  ;;  %v145_v11 = vrot.slane %v72_v9, 5  ;;  %v171_v17 = vrot.slane %v72_v9, 7 }
   0xf   :  { %1168 = vrot.lane.b32.xlu0 %v1167_v3, %s1245_s30  ;;  %v74_v12 = vld [vmem:[%s1746_s2 + $0x5] sm:$0x1]  ;;  %v148_v16 = vrot.slane %v73_v10, 4  ;;  %v178_v18 = vrot.slane %v75_v1, 4  ;;  %v173_v20 = vrot.slane %v73_v10, 6 }
  0x10   :  { %v150_v13 = vsel %vm104_vm0, %v1371_v4, %v140_v7  ;;  %v176_v21 = vrot.slane %v74_v12, 5 }
  0x11   :  { %v151_v19 = vsel %vm106_vm1, %v150_v13, %v142_v8 }
  0x12   :  { %27 = vsyncpa [#allocation5], 0  ;;  %v152_v22 = vsel %vm108_vm2, %v151_v19, %v145_v11  ;;  %v180_v23 = vsel %vm104_vm0, %v1381_v6, %v171_v17  ;;  %s1747_s3 = sld [smem:[#allocation10_spill]]  ;;  %v123_v25 = vsel %vm108_vm2, %v122_v15, 0  ;;  %v1247_v30 = vmov 0   ;;  %s1248_s26 = smov 126  }
  0x13   :  { %v153_v26 = vsel %vm110_vm3, %v152_v22, %v148_v16  ;;  %v181_v27 = vsel %vm106_vm1, %v180_v23, %v173_v20  ;;  %1172 = vset.pattern.permute.xlu1 %v1247_v30  ;;  %1173 = vset.pattern.permute.xlu2 %v1247_v30  ;;  %s1748_s4 = sld [smem:[#allocation9_spill]]  ;;  %vm118_vm4 = vcmask 39936   ;;  %v205_v36 = vrot.slane %v74_v12, 7 }
  0x14   :  { %v154_v28 = vpack.c.bf16 %v153_v26, %v153_v26  ;;  %v182_v29 = vsel %vm108_vm2, %v181_v27, %v176_v21  ;;  %1179 = vset.pattern.permute.xlu0 %v1247_v30  ;;  %v207_v37 = vrot.slane %v75_v1, 6  ;;  %v209_v38 = vrot.slane %v76_v2, 5  ;;  %s1749_s0 = sld [smem:[#allocation11_spill]] }
  0x15   :  { %v183_v31 = vsel %vm110_vm3, %v182_v29, %v178_v18  ;;  %v214_v39 = vsel %vm104_vm0, %v73_v10, %v205_v36  ;;  %vm85_vm5 = vcmask 15360   ;;  %v96_v45 = vrot.slane %v1371_v4, 6 }
  0x16   :  { %v156_v32 = vand.u32 %v154_v28, %v123_v25  ;;  %v184_v33 = vpack.c.bf16 %v183_v31, %v183_v31  ;;  %v215_v40 = vsel %vm106_vm1, %v214_v39, %v207_v37  ;;  %v99_v48 = vrot.slane %v1376_v5, 5  ;;  %vm1112_vm15 = vmneg %vm85_vm5 }
  0x17   :  { %201 = vrot.lane.b32.xlu0 %v1371_v4, %s1248_s26  ;;  %v216_v41 = vsel %vm108_vm2, %v215_v40, %v209_v38  ;;  %v102_v50 = vrot.slane %v1381_v6, 4  ;;  %vm235_vm6 = vcmask 31744   ;;  %v1249_v26 = vmov 16.0  }
  0x18   :  { %v78_v24 = vld [vmem:[%s1747_s3] sm:$0xff]  ;;  %165 = vmatpush.bf16.msra.mxu1 %v156_v32  ;;  %v186_v34 = vand.u32 %v184_v33, %v123_v25  ;;  %1195 = vrcp.f32 %v1249_v26 }
  0x19   :  { %115 = vperm.xlu1 %1172, %v78_v24   ;;  %v77_v35 = vld [vmem:[%s1748_s4] sm:$0xf] }
  0x1a   :  { %195 = vmatpush.bf16.msra.mxu2 %v186_v34 }
  0x1b   :  { %1105 = vmatmul.msk.bf16.vlgmr.msra.gmra.mxu1 %vm118_vm4, %v77_v35 }
  0x1d   :  { %1106 = vmatmul.msk.bf16.vlgmr.msra.gmra.mxu2 %vm118_vm4, %v77_v35 }
  0x1e   :  { %v1196_v28 = vpop.eup %1195 }
  0x1f   :  { %v273_v29 = vmul.f32 16.0, %v1196_v28  ;;  %vm277_vm7 = vweird.f32 %v1196_v28 }
  0x21   :  { %v274_v31 = vsub.f32 1.0, %v273_v29  ;;  %v331_v29 = vld [vmem:[%s1725_s7 + $0x8] sm:$0xff] }
  0x23   :  { %v275_v34 = vmul.f32 %v1196_v28, %v274_v31 }
  0x25   :  { %v276_v36 = vadd.f32 %v1196_v28, %v275_v34 }
  0x27   :  { %v278_v40 = vsel %vm277_vm7, %v1196_v28, %v276_v36  ;;  %v1153_v28 = vld [vmem:[%s1724_s6] sm:$0xff]  ;;  %s1253_s6 = smov [#allocation4]  }
  0x81   :  { %v1169_v42 = vpop.permute.xlu0 %1168 }
  0x82   :  { %v1171_v43 = vunpack.i.h.bf16 %v1169_v42  ;;  %v1170_v44 = vunpack.i.l.bf16 %v1169_v42 }
  0x84   :  { %v91_v46 = vsel %vm85_vm5, 0.0, %v1170_v44  ;;  %v86_v49 = vsel %vm85_vm5, 0.0, %v1171_v43 }
  0x85   :  { %v93_v47 = vrot.slane %v91_v46, 7 }
  0x87   :  { %v105_v51 = vsel %vm104_vm0, %v86_v49, %v93_v47  ;;  %vm1478_vm0 = vmpackc.low %vm1112_vm15, %vm1112_vm15 }
  0x88   :  { %v107_v52 = vsel %vm106_vm1, %v105_v51, %v96_v45  ;;  %vm364_vm1 = vcmask 326656   ;;  %vm1127_vm15 = vmpackc.low %vm85_vm5, %vm85_vm5 }
  0x89   :  { %v202_v53 = vpop.permute.xlu0 %201  ;;  %v109_v54 = vsel %vm108_vm2, %v107_v52, %v99_v48 }
  0x8a   :  { %v204_v55 = vsel %vm85_vm5, %v202_v53, 0.0  ;;  %v111_v56 = vsel %vm110_vm3, %v109_v54, %v102_v50 }
  0x8b   :  { %v212_v57 = vrot.slane %v204_v55, 4  ;;  %v112_v58 = vpack.c.bf16 %v111_v56, %v111_v56  ;;  %v116_v63 = vpop.permute.xlu1 %115  ;;  %v79_v56 = vld [vmem:[%s1749_s0] sm:$0xff] }
  0x8d   :  { %v125_v59 = vand.u32 %v123_v25, %v112_v58  ;;  %v217_v60 = vsel %vm110_vm3, %v216_v41, %v212_v57 }
  0x8e   :  { %v218_v61 = vpack.c.bf16 %v217_v60, %v217_v60  ;;  %v80_v60 = vld [vmem:[%s1723_s5] sm:$0xff] }
  0x8f   :  { %134 = vmatpush.bf16.msra.mxu0 %v125_v59 }
  0x90   :  { %v220_v62 = vand.u32 %v218_v61, %v123_v25 }
  0x92   :  { %1104 = vmatmul.msk.bf16.vlgmr.msra.gmra.mxu0 %vm118_vm4, %v77_v35  ;;  %229 = vmatpush.bf16.msrb.mxu1 %v220_v62 }
  0x95   :  { %1107 = vmatmul.msk.bf16.vlgmr.msrb.gmra.mxu1 %vm118_vm4, %v77_v35 }
  0x98   :  { %v167_v0 = vpop.f32.mrf.mxu1 }
  0x99   :  { %v1433_v1 = vadd.f32 %v167_v0, %v116_v63 }
  0x9b   :  { %v240_v2 = vsel %vm235_vm6, %v1433_v1, 0.0  ;;  %v257_v7 = vmul.f32 %v1433_v1, %v1433_v1 }
  0x9c   :  { %241 = vadd.xlane.f32.xlu2 %v240_v2 }
  0x9d   :  { %v258_v9 = vsel %vm235_vm6, %v257_v7, 0.0 }
  0xa0   :  { %v197_v3 = vpop.f32.mrf.mxu2  ;;  %v169_v4 = vpop.f32.mrf.mxu1 }
  0xa1   :  { %v1437_v5 = vadd.f32 %v197_v3, %v116_v63 }
  0xa3   :  { %v244_v6 = vsel %vm235_vm6, %v1437_v5, 0.0  ;;  %v262_v19 = vmul.f32 %v1437_v5, %v1437_v5 }
  0xa4   :  { %245 = vadd.xlane.f32.xlu2 %v244_v6 }
  0xa5   :  { %v263_v21 = vsel %vm235_vm6, %v262_v19, 0.0 }
  0xa8   :  { %v199_v8 = vpop.f32.mrf.mxu2 }
  0xac   :  { %259 = vadd.xlane.f32.xlu2 %v258_v9 }
 0x10f   :  { %v136_v10 = vpop.f32.mrf.mxu0  ;;  %v242_v24 = vpop.xlane.xlu2 %241 }
 0x110   :  { %v1444_v11 = vadd.f32 %v136_v10, %v116_v63 }
 0x112   :  { %v231_v12 = vpop.f32.mrf.mxu1  ;;  %v236_v13 = vsel %vm235_vm6, %v1444_v11, 0.0  ;;  %v252_v14 = vmul.f32 %v1444_v11, %v1444_v11 }
 0x113   :  { %v1450_v15 = vadd.f32 %v231_v12, %v116_v63  ;;  %237 = vadd.xlane.f32.xlu1 %v236_v13  ;;  %v330_v63 = vld [vmem:[%s1725_s7] sm:$0xff]  ;;  %s1093_s7 = sshll.u32 %s1253_s6, 4  ;;  %s1094_s7 = int_to_ptr.vmem [resolvable:$true] %s1093_s7 }
 0x114   :  { %v253_v16 = vsel %vm235_vm6, %v252_v14, 0.0 }
 0x115   :  { %254 = vadd.xlane.f32.xlu0 %v253_v16  ;;  %v248_v17 = vsel %vm235_vm6, %v1450_v15, 0.0  ;;  %v267_v22 = vmul.f32 %v1450_v15, %v1450_v15 }
 0x116   :  { %249 = vadd.xlane.f32.xlu2 %v248_v17 }
 0x117   :  { %v138_v18 = vpop.f32.mrf.mxu0  ;;  %v268_v23 = vsel %vm235_vm6, %v267_v22, 0.0  ;;  %v246_v25 = vpop.xlane.xlu2 %245 }
 0x11a   :  { %v233_v20 = vpop.f32.mrf.mxu1 }
 0x11e   :  { %264 = vadd.xlane.f32.xlu2 %v263_v21 }
 0x11f   :  { %v260_v27 = vpop.xlane.xlu2 %259 }
 0x126   :  { %269 = vadd.xlane.f32.xlu2 %v268_v23 }
 0x186   :  { %v238_v30 = vpop.xlane.xlu1 %237 }
 0x187   :  { %v243_v33 = vadd.f32 %v242_v24, %v238_v30 }
 0x188   :  { %v255_v38 = vpop.xlane.xlu0 %254 }
 0x189   :  { %v250_v32 = vpop.xlane.xlu2 %249  ;;  %v247_v35 = vadd.f32 %v246_v25, %v243_v33  ;;  %v261_v41 = vadd.f32 %v260_v27, %v255_v38 }
 0x18b   :  { %v251_v39 = vadd.f32 %v250_v32, %v247_v35 }
 0x18d   :  { %v279_v42 = vmul.f32 %v278_v40, %v251_v39 }
 0x18f   :  { %v281_v46 = vmul.f32 %v279_v42, %v279_v42 }
 0x191   :  { %v265_v37 = vpop.xlane.xlu2 %264 }
 0x192   :  { %v266_v43 = vadd.f32 %v265_v37, %v261_v41 }
 0x199   :  { %v270_v44 = vpop.xlane.xlu2 %269 }
 0x19a   :  { %v271_v45 = vadd.f32 %v270_v44, %v266_v43 }
 0x19c   :  { %v280_v47 = vmul.f32 %v278_v40, %v271_v45 }
 0x19e   :  { %v282_v48 = vsub.f32 %v280_v47, %v281_v46 }
 0x1a0   :  { %v283_v49 = vmax.f32 %v282_v48, 0.0 }
 0x1a2   :  { %v284_v50 = vadd.f32 1e-05, %v283_v49 }
 0x1a4   :  { %1197 = vrsqrt.f32 %v284_v50  ;;  %vm291_vm9 = vweird.f32 %v284_v50 }
 0x1aa   :  { %v1198_v51 = vpop.eup %1197 }
 0x1ab   :  { %v286_v52 = vmul.f32 %v1198_v51, %v284_v50  ;;  %vm292_vm8 = vweird.f32 %v1198_v51 }
 0x1ac   :  { %vm293_vm10 = vmor %vm291_vm9, %vm292_vm8 }
 0x1ad   :  { %v287_v53 = vmul.f32 %v1198_v51, %v286_v52 }
 0x1af   :  { %v288_v54 = vmul.f32 0.5, %v287_v53 }
 0x1b1   :  { %v289_v55 = vsub.f32 1.5, %v288_v54 }
 0x1b3   :  { %v290_v57 = vmul.f32 %v1198_v51, %v289_v55 }
 0x1b5   :  { %v294_v58 = vsel %vm293_vm10, %v1198_v51, %v290_v57 }
 0x1b6   :  { %v295_v59 = vmul.f32 %v294_v58, %v79_v56  ;;  %v1250_v56 = vmov 8.0  }
 0x1b7   :  { %1199 = vrcp.f32 %v1250_v56 }
 0x1b8   :  { %300 = vperm.xlu2 %1173, %v295_v59   ;;  %v296_v61 = vmul.f32 %v295_v59, %v279_v42 }
 0x1ba   :  { %v297_v62 = vsub.f32 %v80_v60, %v296_v61 }
 0x1bc   :  { %306 = vperm.xlu1 %1172, %v297_v62  }
 0x1bd   :  { %v1200_v57 = vpop.eup %1199 }
 0x1be   :  { %v446_v59 = vmul.f32 8.0, %v1200_v57  ;;  %vm450_vm2 = vweird.f32 %v1200_v57 }
 0x1c0   :  { %v447_v60 = vsub.f32 1.0, %v446_v59 }
 0x1c2   :  { %v448_v62 = vmul.f32 %v1200_v57, %v447_v60 }
 0x1c4   :  { %351 = vperm.xlu1 %1172, %v330_v63   ;;  %v449_v63 = vadd.f32 %v1200_v57, %v448_v62 }
 0x212   :  { %v301_v0 = vpop.permute.xlu2 %300 }
 0x213   :  { %v303_v2 = vmul.f32 %v301_v0, %v1444_v11  ;;  %v313_v3 = vmul.f32 %v301_v0, %v1433_v1  ;;  %v318_v4 = vmul.f32 %v301_v0, %v1437_v5  ;;  %v323_v6 = vmul.f32 %v301_v0, %v1450_v15 }
 0x22e   :  { %v307_v7 = vpop.permute.xlu1 %306 }
 0x22f   :  { %v309_v8 = vadd.f32 %v307_v7, %v303_v2  ;;  %v314_v9 = vadd.f32 %v313_v3, %v307_v7  ;;  %v319_v10 = vadd.f32 %v318_v4, %v307_v7  ;;  %v324_v12 = vadd.f32 %v323_v6, %v307_v7 }
 0x230   :  { %v451_v2 = vsel %vm450_vm2, %v1200_v57, %v449_v63 }
 0x231   :  { %v321_v13 = vmul.f32 0.2, %v319_v10  ;;  %vm310_vm11 = vcmp.gt.f32.partialorder %v309_v8, 0.0  ;;  %v311_v14 = vmul.f32 0.2, %v309_v8  ;;  %vm320_vm12 = vcmp.gt.f32.partialorder %v319_v10, 0.0 }
 0x232   :  { %vm325_vm13 = vcmp.gt.f32.partialorder %v324_v12, 0.0  ;;  %v326_v16 = vmul.f32 0.2, %v324_v12  ;;  %v316_v17 = vmul.f32 0.2, %v314_v9  ;;  %vm315_vm14 = vcmp.gt.f32.partialorder %v314_v9, 0.0 }
 0x233   :  { %v312_v18 = vsel %vm310_vm11, %v309_v8, %v311_v14  ;;  %v322_v11 = vsel %vm320_vm12, %v319_v10, %v321_v13 }
 0x234   :  { %386 = vrot.lane.b32.xlu0 %v312_v18, %s1248_s26  ;;  %v327_v1 = vsel %vm325_vm13, %v324_v12, %v326_v16  ;;  %v348_v5 = vpack.c.bf16 %v322_v11, %v322_v11  ;;  %v317_v21 = vsel %vm315_vm14, %v314_v9, %v316_v17 }
 0x235   :  { %v1174_v15 = vpack.i.bf16 %v327_v1, %v322_v11  ;;  %v390_v19 = vpack.c.bf16 %v327_v1, %v322_v11  ;;  %v347_v22 = vpack.c.bf16 %v317_v21, %v312_v18 }
 0x236   :  { %v369_v20 = vsel %vm110_vm3, %v348_v5, 0  ;;  %v352_v34 = vpop.permute.xlu1 %351 }
 0x237   :  { %1175 = vrot.lane.b32.xlu2 %v1174_v15, %s1245_s30  ;;  %376 = vmatpush.bf16.msrb.mxu0 %v369_v20 }
 0x23b   :  { %377 = vmatpush.bf16.msrb.mxu0 %v347_v22 }
 0x23c   :  { %356 = vperm.xlu0 %1179, %v331_v29   ;;  %v332_v29 = vld [vmem:[%s1726_s8] sm:$0xff] }
 0x291   :  { %v1176_v23 = vpop.permute.xlu2 %1175 }
 0x292   :  { %v1178_v24 = vunpack.i.h.bf16 %v1176_v23  ;;  %v1177_v25 = vunpack.i.l.bf16 %v1176_v23 }
 0x294   :  { %v1115_v27 = vpack.c.bf16 %v1178_v24, %v1177_v25 }
 0x296   :  { %1116 = vmatpush.bf16.msk.msrb.mxu0 %vm1478_vm0, %v1115_v27 }
 0x299   :  { %1117 = vmatmul.msk.bf16.vlgmr.msrb.gmra.mxu0 %vm364_vm1, %v1153_v28 }
 0x2a6   :  { %v387_v30 = vpop.permute.xlu0 %386 }
 0x2a7   :  { %v389_v31 = vsel %vm85_vm5, %v387_v30, 0.0 }
 0x2a8   :  { %v391_v32 = vpack.c.bf16 %v389_v31, %v389_v31 }
 0x2aa   :  { %v393_v33 = vsel %vm110_vm3, %v391_v32, 0 }
 0x2ab   :  { %400 = vmatpush.bf16.msra.mxu1 %v393_v33  ;;  %v334_v33 = vld [vmem:[%s1727_s9] sm:$0xff] }
 0x2ae   :  { %v357_v40 = vpop.permute.xlu0 %356 }
 0x2af   :  { %401 = vmatpush.bf16.msra.mxu1 %v390_v19 }
 0x2b3   :  { %402 = vmatpush.bf16.msra.mxu1 %v347_v22 }
 0x2b6   :  { %1118 = vmatmul.msk.bf16.vlgmr.msra.gmra.mxu1 %vm364_vm1, %v1153_v28  ;;  %vm609_vm1 = vcmask 654336  }
 0x316   :  { %v380_v35 = vpop.f32.mrf.mxu0 }
 0x317   :  { %v1492_v36 = vadd.f32 %v380_v35, %v352_v34 }
 0x319   :  { %v409_v37 = vsel %vm235_vm6, %v1492_v36, 0.0  ;;  %v425_v38 = vmul.f32 %v1492_v36, %v1492_v36 }
 0x31a   :  { %410 = vadd.xlane.f32.xlu2 %v409_v37 }
 0x31b   :  { %v427_v39 = vsel %vm235_vm6, %v425_v38, 0.0 }
 0x31c   :  { %428 = vadd.xlane.f32.xlu1 %v427_v39 }
 0x31e   :  { %v382_v41 = vpop.f32.mrf.mxu0 }
 0x31f   :  { %v1499_v42 = vadd.f32 %v382_v41, %v357_v40 }
 0x321   :  { %v412_v43 = vsel %vm235_vm6, %v1499_v42, 0.0  ;;  %v426_v54 = vmul.f32 %v1499_v42, %v1499_v42 }
 0x323   :  { %v430_v55 = vsel %vm235_vm6, %v426_v54, 0.0 }
 0x324   :  { %413 = vadd.xlane.f32.xlu1 %v412_v43  ;;  %v333_v43 = vld [vmem:[%s1726_s8 + $0x8] sm:$0xff] }
 0x333   :  { %v404_v44 = vpop.f32.mrf.mxu1 }
 0x334   :  { %v1503_v45 = vadd.f32 %v404_v44, %v352_v34 }
 0x336   :  { %v417_v46 = vsel %vm235_vm6, %v1503_v45, 0.0  ;;  %v435_v47 = vmul.f32 %v1503_v45, %v1503_v45 }
 0x337   :  { %418 = vadd.xlane.f32.xlu0 %v417_v46 }
 0x338   :  { %v437_v48 = vsel %vm235_vm6, %v435_v47, 0.0 }
 0x339   :  { %438 = vadd.xlane.f32.xlu1 %v437_v48  ;;  %v335_v48 = vld [vmem:[%s1727_s9 + $0x8] sm:$0xff] }
 0x33b   :  { %v406_v49 = vpop.f32.mrf.mxu1 }
 0x33c   :  { %v1510_v50 = vadd.f32 %v406_v49, %v357_v40 }
 0x33e   :  { %v420_v51 = vsel %vm235_vm6, %v1510_v50, 0.0  ;;  %v436_v52 = vmul.f32 %v1510_v50, %v1510_v50 }
 0x33f   :  { %421 = vadd.xlane.f32.xlu2 %v420_v51 }
 0x340   :  { %v440_v53 = vsel %vm235_vm6, %v436_v52, 0.0 }
 0x341   :  { %441 = vadd.xlane.f32.xlu0 %v440_v53 }
 0x347   :  { %431 = vadd.xlane.f32.xlu2 %v430_v55 }
 0x38d   :  { %v411_v0 = vpop.xlane.xlu2 %410 }
 0x38f   :  { %v429_v58 = vpop.xlane.xlu1 %428 }
 0x397   :  { %v414_v61 = vpop.xlane.xlu1 %413 }
 0x3aa   :  { %v419_v3 = vpop.xlane.xlu0 %418 }
 0x3ab   :  { %v423_v4 = vadd.f32 %v419_v3, %v411_v0 }
 0x3ac   :  { %v439_v6 = vpop.xlane.xlu1 %438 }
 0x3ad   :  { %v452_v7 = vmul.f32 %v451_v2, %v423_v4  ;;  %v443_v8 = vadd.f32 %v439_v6, %v429_v58 }
 0x3af   :  { %v456_v9 = vmul.f32 %v452_v7, %v452_v7  ;;  %v454_v10 = vmul.f32 %v451_v2, %v443_v8 }
 0x3b1   :  { %v458_v12 = vsub.f32 %v454_v10, %v456_v9 }
 0x3b2   :  { %v422_v13 = vpop.xlane.xlu2 %421 }
 0x3b3   :  { %v460_v14 = vmax.f32 %v458_v12, 0.0  ;;  %v424_v17 = vadd.f32 %v422_v13, %v414_v61  ;;  %v536_v12 = vld [vmem:[%s1729_s11 + $0x10] sm:$0xff]  ;;  %v537_v13 = vld [vmem:[%s1729_s11 + $0x18] sm:$0xff] }
 0x3b4   :  { %v442_v11 = vpop.xlane.xlu0 %441 }
 0x3b5   :  { %v462_v16 = vadd.f32 1e-05, %v460_v14  ;;  %v453_v18 = vmul.f32 %v451_v2, %v424_v17  ;;  %v535_v14 = vld [vmem:[%s1729_s11 + $0x8] sm:$0xff] }
 0x3b7   :  { %1201 = vrsqrt.f32 %v462_v16  ;;  %v457_v19 = vmul.f32 %v453_v18, %v453_v18  ;;  %vm470_vm4 = vweird.f32 %v462_v16 }
 0x3ba   :  { %v432_v1 = vpop.xlane.xlu2 %431 }
 0x3bb   :  { %v444_v5 = vadd.f32 %v442_v11, %v432_v1 }
 0x3bd   :  { %v1202_v15 = vpop.eup %1201  ;;  %v455_v20 = vmul.f32 %v451_v2, %v444_v5 }
 0x3be   :  { %v465_v21 = vmul.f32 %v1202_v15, %v462_v16  ;;  %vm471_vm3 = vweird.f32 %v1202_v15 }
 0x3bf   :  { %v459_v22 = vsub.f32 %v455_v20, %v457_v19  ;;  %vm472_vm7 = vmor %vm470_vm4, %vm471_vm3 }
 0x3c0   :  { %v466_v23 = vmul.f32 %v1202_v15, %v465_v21 }
 0x3c1   :  { %v461_v24 = vmax.f32 %v459_v22, 0.0 }
 0x3c2   :  { %v467_v25 = vmul.f32 0.5, %v466_v23 }
 0x3c3   :  { %v463_v27 = vadd.f32 1e-05, %v461_v24  ;;  %v1154_v24 = vld [vmem:[%s1728_s10] sm:$0xff] }
 0x3c4   :  { %v468_v28 = vsub.f32 1.5, %v467_v25  ;;  %v1155_v25 = vld [vmem:[%s1728_s10 + $0x8] sm:$0xff] }
 0x3c5   :  { %1203 = vrsqrt.f32 %v463_v27  ;;  %vm480_vm9 = vweird.f32 %v463_v27 }
 0x3c6   :  { %v469_v30 = vmul.f32 %v1202_v15, %v468_v28 }
 0x3c8   :  { %v473_v31 = vsel %vm472_vm7, %v1202_v15, %v469_v30 }
 0x3c9   :  { %v484_v32 = vmul.f32 %v473_v31, %v332_v29 }
 0x3cb   :  { %v1204_v34 = vpop.eup %1203  ;;  %492 = vperm.xlu2 %1173, %v484_v32   ;;  %v486_v35 = vmul.f32 %v484_v32, %v452_v7 }
 0x3cc   :  { %v475_v37 = vmul.f32 %v1204_v34, %v463_v27  ;;  %vm481_vm8 = vweird.f32 %v1204_v34 }
 0x3cd   :  { %v488_v38 = vsub.f32 %v334_v33, %v486_v35  ;;  %vm482_vm10 = vmor %vm480_vm9, %vm481_vm8 }
 0x3ce   :  { %v476_v39 = vmul.f32 %v1204_v34, %v475_v37 }
 0x3cf   :  { %504 = vperm.xlu0 %1179, %v488_v38  }
 0x3d0   :  { %v477_v40 = vmul.f32 0.5, %v476_v39 }
 0x3d2   :  { %v478_v41 = vsub.f32 1.5, %v477_v40 }
 0x3d4   :  { %v479_v44 = vmul.f32 %v1204_v34, %v478_v41 }
 0x3d6   :  { %v483_v46 = vsel %vm482_vm10, %v1204_v34, %v479_v44 }
 0x3d7   :  { %v485_v47 = vmul.f32 %v483_v46, %v333_v43 }
 0x3d9   :  { %497 = vperm.xlu1 %1172, %v485_v47   ;;  %v487_v49 = vmul.f32 %v485_v47, %v453_v18 }
 0x3db   :  { %v489_v51 = vsub.f32 %v335_v48, %v487_v49 }
 0x3dd   :  { %509 = vperm.xlu2 %1173, %v489_v51  }
 0x425   :  { %v493_v52 = vpop.permute.xlu2 %492 }
 0x426   :  { %v500_v54 = vmul.f32 %v493_v52, %v1492_v36  ;;  %v520_v55 = vmul.f32 %v493_v52, %v1503_v45 }
 0x437   :  { %v510_v61 = vpop.permute.xlu2 %509 }
 0x441   :  { %v505_v53 = vpop.permute.xlu0 %504 }
 0x442   :  { %v512_v56 = vadd.f32 %v505_v53, %v500_v54  ;;  %v522_v57 = vadd.f32 %v520_v55, %v505_v53  ;;  %v1251_v54 = vmov 4.0  }
 0x443   :  { %1205 = vrcp.f32 %v1251_v54 }
 0x444   :  { %v516_v62 = vmul.f32 0.2, %v512_v56  ;;  %v526_v63 = vmul.f32 0.2, %v522_v57  ;;  %vm514_vm11 = vcmp.gt.f32.partialorder %v512_v56, 0.0  ;;  %vm524_vm12 = vcmp.gt.f32.partialorder %v522_v57, 0.0 }
 0x446   :  { %v518_v36 = vsel %vm514_vm11, %v512_v56, %v516_v62  ;;  %v528_v6 = vsel %vm524_vm12, %v522_v57, %v526_v63 }
 0x449   :  { %v1206_v55 = vpop.eup %1205 }
 0x44a   :  { %v672_v56 = vmul.f32 4.0, %v1206_v55 }
 0x44b   :  { %v498_v58 = vpop.permute.xlu1 %497 }
 0x44c   :  { %v501_v59 = vmul.f32 %v498_v58, %v1499_v42  ;;  %v521_v60 = vmul.f32 %v498_v58, %v1510_v50  ;;  %v534_v50 = vld [vmem:[%s1729_s11] sm:$0xff]  ;;  %v673_v57 = vsub.f32 1.0, %v672_v56  ;;  %v541_v56 = vld [vmem:[%s1730_s12 + $0x18] sm:$0xff] }
 0x44e   :  { %v513_v0 = vadd.f32 %v510_v61, %v501_v59  ;;  %v523_v2 = vadd.f32 %v521_v60, %v510_v61  ;;  %v674_v58 = vmul.f32 %v1206_v55, %v673_v57 }
 0x450   :  { %vm515_vm13 = vcmp.gt.f32.partialorder %v513_v0, 0.0  ;;  %v517_v3 = vmul.f32 0.2, %v513_v0  ;;  %v527_v4 = vmul.f32 0.2, %v523_v2  ;;  %vm525_vm14 = vcmp.gt.f32.partialorder %v523_v2, 0.0 }
 0x451   :  { %v675_v59 = vadd.f32 %v1206_v55, %v674_v58 }
 0x452   :  { %v519_v45 = vsel %vm515_vm13, %v513_v0, %v517_v3  ;;  %v529_v7 = vsel %vm525_vm14, %v523_v2, %v527_v4 }
 0x453   :  { %v1190_v8 = vpack.i.bf16 %v519_v45, %v518_v36  ;;  %v1185_v9 = vpack.i.bf16 %v529_v7, %v528_v6  ;;  %v577_v42 = vpack.c.bf16 %v529_v7, %v528_v6  ;;  %v576_v10 = vpack.c.bf16 %v519_v45, %v518_v36 }
 0x455   :  { %1191 = vrot.lane.b32.xlu2 %v1190_v8, %s1245_s30  ;;  %1181 = vrot.lane.b32.xlu0 %v1190_v8, %s1248_s26 }
 0x456   :  { %1186 = vrot.lane.b32.xlu1 %v1185_v9, %s1245_s30 }
 0x45d   :  { %581 = vperm.xlu2 %1173, %v534_v50   ;;  %591 = vperm.xlu0 %1179, %v536_v12  }
 0x45e   :  { %596 = vperm.xlu1 %1172, %v537_v13  }
 0x465   :  { %586 = vperm.xlu0 %1179, %v535_v14  }
 0x4af   :  { %v1192_v19 = vpop.permute.xlu2 %1191 }
 0x4b0   :  { %v1194_v20 = vunpack.i.h.bf16 %v1192_v19  ;;  %v1193_v21 = vunpack.i.l.bf16 %v1192_v19 }
 0x4b2   :  { %v1138_v23 = vpack.c.bf16 %v1194_v20, %v1193_v21 }
 0x4b7   :  { %v582_v27 = vpop.permute.xlu2 %581 }
 0x4c7   :  { %v1182_v16 = vpop.permute.xlu0 %1181 }
 0x4c8   :  { %v1184_v17 = vunpack.i.h.bf16 %v1182_v16  ;;  %v1183_v18 = vunpack.i.l.bf16 %v1182_v16  ;;  %v1187_v1 = vpop.permute.xlu1 %1186 }
 0x4c9   :  { %v1189_v5 = vunpack.i.h.bf16 %v1187_v1  ;;  %v1188_v15 = vunpack.i.l.bf16 %v1187_v1 }
 0x4ca   :  { %v1128_v11 = vpack.c.bf16 %v1184_v17, %v1183_v18 }
 0x4cb   :  { %v1133_v22 = vpack.c.bf16 %v1189_v5, %v1188_v15 }
 0x4cc   :  { %1129 = vmatpush.bf16.msk.msrb.mxu2 %vm1127_vm15, %v1128_v11 }
 0x4cf   :  { %v592_v32 = vpop.permute.xlu0 %591 }
 0x4d0   :  { %620 = vmatpush.bf16.msrb.mxu2 %v577_v42  ;;  %v597_v38 = vpop.permute.xlu1 %596 }
 0x4d4   :  { %621 = vmatpush.bf16.msrb.mxu2 %v576_v10 }
 0x4d7   :  { %v587_v39 = vpop.permute.xlu0 %586 }
 0x4d8   :  { %1134 = vmatpush.bf16.msk.msrb.mxu2 %vm1478_vm0, %v1133_v22 }
 0x4dc   :  { %1139 = vmatpush.bf16.msk.msrb.mxu2 %vm1478_vm0, %v1138_v23  ;;  %vm676_vm0 = vweird.f32 %v1206_v55 }
 0x4dd   :  { %v677_v60 = vsel %vm676_vm0, %v1206_v55, %v675_v59 }
 0x4df   :  { %1140 = vmatmul.msk.bf16.vlgmr.msrb.gmra.mxu2 %vm609_vm1, %v1154_v24 }
 0x4ef   :  { %1141 = vmatmul.msk.bf16.gmra.mxu2 %vm609_vm1, %v1155_v25 }
 0x562   :  { %v625_v28 = vpop.f32.mrf.mxu2 }
 0x563   :  { %v1563_v29 = vadd.f32 %v625_v28, %v582_v27 }
 0x565   :  { %v635_v30 = vsel %vm235_vm6, %v1563_v29, 0.0  ;;  %v651_v51 = vmul.f32 %v1563_v29, %v1563_v29 }
 0x566   :  { %636 = vadd.xlane.f32.xlu2 %v635_v30 }
 0x567   :  { %v655_v53 = vsel %vm235_vm6, %v651_v51, 0.0 }
 0x56a   :  { %v627_v31 = vpop.f32.mrf.mxu2 }
 0x56b   :  { %v1574_v41 = vadd.f32 %v627_v31, %v587_v39 }
 0x56d   :  { %v638_v48 = vsel %vm235_vm6, %v1574_v41, 0.0  ;;  %v652_v49 = vmul.f32 %v1574_v41, %v1574_v41 }
 0x56f   :  { %v658_v52 = vsel %vm235_vm6, %v652_v49, 0.0 }
 0x572   :  { %v630_v33 = vpop.f32.mrf.mxu2 }
 0x573   :  { %v1567_v26 = vadd.f32 %v630_v33, %v592_v32 }
 0x575   :  { %v641_v34 = vsel %vm235_vm6, %v1567_v26, 0.0  ;;  %v653_v35 = vmul.f32 %v1567_v26, %v1567_v26 }
 0x576   :  { %642 = vadd.xlane.f32.xlu1 %v641_v34  ;;  %v540_v34 = vld [vmem:[%s1730_s12 + $0x10] sm:$0xff] }
 0x577   :  { %v661_v37 = vsel %vm235_vm6, %v653_v35, 0.0 }
 0x578   :  { %662 = vadd.xlane.f32.xlu0 %v661_v37 }
 0x57a   :  { %v632_v40 = vpop.f32.mrf.mxu2 }
 0x57b   :  { %v1576_v43 = vadd.f32 %v632_v40, %v597_v38 }
 0x57d   :  { %v644_v44 = vsel %vm235_vm6, %v1576_v43, 0.0  ;;  %v654_v46 = vmul.f32 %v1576_v43, %v1576_v43 }
 0x57e   :  { %645 = vadd.xlane.f32.xlu2 %v644_v44  ;;  %v544_v44 = vld [vmem:[%s1731_s13 + $0x10] sm:$0xff] }
 0x57f   :  { %v664_v47 = vsel %vm235_vm6, %v654_v46, 0.0 }
 0x580   :  { %665 = vadd.xlane.f32.xlu1 %v664_v47  ;;  %639 = vadd.xlane.f32.xlu0 %v638_v48 }
 0x586   :  { %659 = vadd.xlane.f32.xlu2 %v658_v52 }
 0x588   :  { %656 = vadd.xlane.f32.xlu1 %v655_v53 }
 0x5d9   :  { %v637_v61 = vpop.xlane.xlu2 %636 }
 0x5da   :  { %v1597_v13 = vmul.f32 %v677_v60, %v637_v61 }
 0x5dc   :  { %v686_v19 = vmul.f32 %v1597_v13, %v1597_v13 }
 0x5e9   :  { %v643_v62 = vpop.xlane.xlu1 %642 }
 0x5ea   :  { %v680_v63 = vmul.f32 %v677_v60, %v643_v62 }
 0x5eb   :  { %v663_v0 = vpop.xlane.xlu0 %662 }
 0x5ec   :  { %v688_v2 = vmul.f32 %v680_v63, %v680_v63  ;;  %v684_v3 = vmul.f32 %v677_v60, %v663_v0 }
 0x5ee   :  { %v692_v4 = vsub.f32 %v684_v3, %v688_v2 }
 0x5f0   :  { %v696_v36 = vmax.f32 %v692_v4, 0.0  ;;  %v538_v4 = vld [vmem:[%s1730_s12] sm:$0xff] }
 0x5f1   :  { %v646_v45 = vpop.xlane.xlu2 %645 }
 0x5f2   :  { %v700_v6 = vadd.f32 1e-05, %v696_v36  ;;  %v1591_v7 = vmul.f32 %v677_v60, %v646_v45 }
 0x5f3   :  { %v666_v8 = vpop.xlane.xlu1 %665  ;;  %v640_v9 = vpop.xlane.xlu0 %639 }
 0x5f4   :  { %1207 = vrsqrt.f32 %v700_v6  ;;  %v689_v42 = vmul.f32 %v1591_v7, %v1591_v7  ;;  %v685_v10 = vmul.f32 %v677_v60, %v666_v8  ;;  %v1595_v12 = vmul.f32 %v677_v60, %v640_v9  ;;  %v539_v9 = vld [vmem:[%s1730_s12 + $0x8] sm:$0xff]  ;;  %s1752_s12 = sld [smem:[#allocation8_spill]] }
 0x5f5   :  { %vm728_vm2 = vweird.f32 %v700_v6 }
 0x5f6   :  { %v693_v50 = vsub.f32 %v685_v10, %v689_v42  ;;  %v687_v11 = vmul.f32 %v1595_v12, %v1595_v12 }
 0x5f8   :  { %v697_v14 = vmax.f32 %v693_v50, 0.0 }
 0x5f9   :  { %v660_v16 = vpop.xlane.xlu2 %659 }
 0x5fa   :  { %v1208_v17 = vpop.eup %1207  ;;  %v701_v18 = vadd.f32 1e-05, %v697_v14  ;;  %v683_v1 = vmul.f32 %v677_v60, %v660_v16 }
 0x5fb   :  { %v723_v5 = vmul.f32 %v1208_v17, %v700_v6  ;;  %v657_v15 = vpop.xlane.xlu1 %656  ;;  %vm729_vm6 = vweird.f32 %v1208_v17 }
 0x5fc   :  { %1209 = vrsqrt.f32 %v701_v18  ;;  %v691_v20 = vsub.f32 %v683_v1, %v687_v11  ;;  %v682_v21 = vmul.f32 %v677_v60, %v657_v15  ;;  %vm730_vm3 = vmor %vm728_vm2, %vm729_vm6  ;;  %vm738_vm7 = vweird.f32 %v701_v18 }
 0x5fd   :  { %v724_v22 = vmul.f32 %v1208_v17, %v723_v5  ;;  %vm902_vm2 = vcmask 785408  }
 0x5fe   :  { %v695_v23 = vmax.f32 %v691_v20, 0.0  ;;  %v690_v24 = vsub.f32 %v682_v21, %v686_v19 }
 0x5ff   :  { %v725_v25 = vmul.f32 0.5, %v724_v22 }
 0x600   :  { %v699_v27 = vadd.f32 1e-05, %v695_v23  ;;  %v694_v28 = vmax.f32 %v690_v24, 0.0 }
 0x601   :  { %v726_v30 = vsub.f32 1.5, %v725_v25 }
 0x602   :  { %v1210_v31 = vpop.eup %1209  ;;  %1211 = vrsqrt.f32 %v699_v27  ;;  %v698_v32 = vadd.f32 1e-05, %v694_v28  ;;  %vm718_vm13 = vweird.f32 %v699_v27 }
 0x603   :  { %v733_v33 = vmul.f32 %v1210_v31, %v701_v18  ;;  %v727_v35 = vmul.f32 %v1208_v17, %v726_v30  ;;  %vm739_vm4 = vweird.f32 %v1210_v31 }
 0x604   :  { %1213 = vrsqrt.f32 %v698_v32  ;;  %vm740_vm8 = vmor %vm738_vm7, %vm739_vm4  ;;  %vm708_vm10 = vweird.f32 %v698_v32 }
 0x605   :  { %v734_v37 = vmul.f32 %v1210_v31, %v733_v33  ;;  %v731_v38 = vsel %vm730_vm3, %v1208_v17, %v727_v35  ;;  %v543_v17 = vld [vmem:[%s1731_s13 + $0x8] sm:$0xff] }
 0x606   :  { %v744_v39 = vmul.f32 %v731_v38, %v540_v34  ;;  %v868_v38 = vld [vmem:[%s1733_s15] sm:$0xff] }
 0x607   :  { %v735_v40 = vmul.f32 0.5, %v734_v37 }
 0x608   :  { %v1212_v46 = vpop.eup %1211  ;;  %766 = vperm.xlu0 %1179, %v744_v39   ;;  %v748_v47 = vmul.f32 %v744_v39, %v680_v63  ;;  %v545_v63 = vld [vmem:[%s1731_s13 + $0x18] sm:$0xff] }
 0x609   :  { %v736_v48 = vsub.f32 1.5, %v735_v40  ;;  %v713_v49 = vmul.f32 %v1212_v46, %v699_v27  ;;  %vm719_vm11 = vweird.f32 %v1212_v46  ;;  %v989_v39 = vld [vmem:[%s1734_s16 + $0x18] sm:$0xff] }
 0x60a   :  { %v1214_v51 = vpop.eup %1213  ;;  %v752_v52 = vsub.f32 %v544_v44, %v748_v47  ;;  %vm720_vm14 = vmor %vm718_vm13, %vm719_vm11  ;;  %v871_v40 = vld [vmem:[%s1733_s15 + $0x18] sm:$0xff]  ;;  %v987_v44 = vld [vmem:[%s1734_s16 + $0x8] sm:$0xff]  ;;  %vm1086_vm13 = vcmask 8192  }
 0x60b   :  { %v737_v53 = vmul.f32 %v1210_v31, %v736_v48  ;;  %v714_v54 = vmul.f32 %v1212_v46, %v713_v49  ;;  %v703_v55 = vmul.f32 %v1214_v51, %v698_v32  ;;  %vm709_vm9 = vweird.f32 %v1214_v51  ;;  %v1017_v47 = vld [vmem:[%s1735_s17 + $0x18] sm:$0xff]  ;;  %v1015_v48 = vld [vmem:[%s1735_s17 + $0x8] sm:$0xff]  ;;  %v1016_v49 = vld [vmem:[%s1735_s17 + $0x10] sm:$0xff] }
 0x60c   :  { %790 = vperm.xlu2 %1173, %v752_v52   ;;  %vm710_vm12 = vmor %vm708_vm10, %vm709_vm9  ;;  %v1014_v52 = vld [vmem:[%s1735_s17] sm:$0xff] }
 0x60d   :  { %v715_v57 = vmul.f32 0.5, %v714_v54  ;;  %v704_v58 = vmul.f32 %v1214_v51, %v703_v55  ;;  %v741_v59 = vsel %vm740_vm8, %v1210_v31, %v737_v53  ;;  %v1055_v53 = vld [vmem:[#allocation3] sm:$0x1]  ;;  %v840_v54 = vld [vmem:[%s1752_s12 + $0x10] sm:$0xff]  ;;  %v841_v55 = vld [vmem:[%s1752_s12 + $0x18] sm:$0xff] }
 0x60e   :  { %v745_v60 = vmul.f32 %v741_v59, %v541_v56  ;;  %844 = vst.msk [vmem:[#allocation2 + $0x50] sm:$0xff] %vm85_vm5, %v840_v54  ;;  %v838_v56 = vld [vmem:[%s1752_s12] sm:$0xff] }
 0x60f   :  { %v716_v61 = vsub.f32 1.5, %v715_v57  ;;  %v705_v62 = vmul.f32 0.5, %v704_v58  ;;  %845 = vst.msk [vmem:[#allocation2 + $0x58] sm:$0xff] %vm85_vm5, %v841_v55  ;;  %v839_v57 = vld [vmem:[%s1752_s12 + $0x8] sm:$0xff] }
 0x610   :  { %v749_v0 = vmul.f32 %v745_v60, %v1591_v7  ;;  %v542_v7 = vld [vmem:[%s1731_s13] sm:$0xff]  ;;  %842 = vst.msk [vmem:[#allocation2 + $0x40] sm:$0xff] %vm85_vm5, %v838_v56 }
 0x611   :  { %v706_v2 = vsub.f32 1.5, %v705_v62  ;;  %v717_v45 = vmul.f32 %v1212_v46, %v716_v61  ;;  %843 = vst.msk [vmem:[#allocation2 + $0x48] sm:$0xff] %vm85_vm5, %v839_v57 }
 0x612   :  { %v753_v3 = vsub.f32 %v545_v63, %v749_v0 }
 0x613   :  { %v707_v36 = vmul.f32 %v1214_v51, %v706_v2  ;;  %v721_v42 = vsel %vm720_vm14, %v1212_v46, %v717_v45  ;;  %v988_v46 = vld [vmem:[%s1734_s16 + $0x10] sm:$0xff] }
 0x614   :  { %795 = vperm.xlu0 %1179, %v753_v3   ;;  %v743_v14 = vmul.f32 %v721_v42, %v539_v9 }
 0x615   :  { %v711_v6 = vsel %vm710_vm12, %v1214_v51, %v707_v36  ;;  %v986_v51 = vld [vmem:[%s1734_s16] sm:$0xff]  ;;  %v860_v58 = vld [vmem:[#allocation2 + $0x50] sm:$0xff]  ;;  %vm1062_vm12 = vcmask 261120  }
 0x616   :  { %v742_v8 = vmul.f32 %v711_v6, %v538_v4  ;;  %v747_v16 = vmul.f32 %v743_v14, %v1595_v12  ;;  %v861_v59 = vld [vmem:[#allocation2 + $0x58] sm:$0xff] }
 0x617   :  { %v858_v61 = vld [vmem:[#allocation2 + $0x40] sm:$0xff] }
 0x618   :  { %756 = vperm.xlu1 %1172, %v742_v8   ;;  %v746_v10 = vmul.f32 %v742_v8, %v1597_v13  ;;  %v751_v18 = vsub.f32 %v543_v17, %v747_v16  ;;  %v859_v62 = vld [vmem:[#allocation2 + $0x48] sm:$0xff] }
 0x619   :  { %v866_v63 = vpack.c.bf16 %v859_v62, %v858_v61 }
 0x61a   :  { %v750_v50 = vsub.f32 %v542_v7, %v746_v10 }
 0x61c   :  { %780 = vperm.xlu2 %1173, %v750_v50   ;;  %761 = vperm.xlu0 %1179, %v743_v14  }
 0x620   :  { %771 = vperm.xlu1 %1172, %v745_v60   ;;  %v867_v60 = vpack.c.bf16 %v861_v59, %v860_v58 }
 0x622   :  { %911 = vmatpush.bf16.msra.mxu3 %v867_v60 }
 0x626   :  { %912 = vmatpush.bf16.msra.mxu3 %v866_v63 }
 0x628   :  { %785 = vperm.xlu1 %1172, %v751_v18   ;;  %v1156_v18 = vld [vmem:[%s1732_s14] sm:$0xff] }
 0x666   :  { %v791_v5 = vpop.permute.xlu2 %790 }
 0x676   :  { %v781_v21 = vpop.permute.xlu2 %780 }
 0x67a   :  { %v767_v11 = vpop.permute.xlu0 %766 }
 0x67b   :  { %v776_v1 = vmul.f32 %v767_v11, %v1567_v26  ;;  %v1157_v11 = vld [vmem:[%s1732_s14 + $0x8] sm:$0xff] }
 0x67d   :  { %v800_v15 = vadd.f32 %v791_v5, %v776_v1 }
 0x67f   :  { %vm804_vm15 = vcmp.gt.f32.partialorder %v800_v15, 0.0  ;;  %v808_v13 = vmul.f32 0.2, %v800_v15 }
 0x681   :  { %v812_v19 = vsel %vm804_vm15, %v800_v15, %v808_v13  ;;  %v1252_v13 = vmov 32.0  }
 0x682   :  { %826 = vrot.lane.b32.xlu0 %v812_v19, %s1248_s26  ;;  %816 = vst.msk [vmem:[#allocation2 + $0x10] sm:$0xff] %vm85_vm5, %v812_v19  ;;  %1215 = vrcp.f32 %v1252_v13 }
 0x686   :  { %v796_v22 = vpop.permute.xlu0 %795 }
 0x689   :  { %v852_v10 = vld [vmem:[#allocation2 + $0x10] sm:$0xff] }
 0x68a   :  { %v757_v20 = vpop.permute.xlu1 %756 }
 0x68b   :  { %v774_v12 = vmul.f32 %v757_v20, %v1563_v29  ;;  %v869_v29 = vld [vmem:[%s1733_s15 + $0x8] sm:$0xff] }
 0x68d   :  { %v798_v23 = vadd.f32 %v781_v21, %v774_v12 }
 0x68e   :  { %v762_v30 = vpop.permute.xlu0 %761 }
 0x68f   :  { %vm802_vm1 = vcmp.gt.f32.partialorder %v798_v23, 0.0  ;;  %v806_v24 = vmul.f32 0.2, %v798_v23  ;;  %v775_v32 = vmul.f32 %v762_v30, %v1574_v41  ;;  %v870_v41 = vld [vmem:[%s1733_s15 + $0x10] sm:$0xff] }
 0x691   :  { %v810_v25 = vsel %vm802_vm1, %v798_v23, %v806_v24  ;;  %v1216_v24 = vpop.eup %1215 }
 0x692   :  { %v772_v27 = vpop.permute.xlu1 %771  ;;  %822 = vrot.lane.b32.xlu1 %v810_v25, %s1248_s26  ;;  %814 = vst.msk [vmem:[#allocation2] sm:$0xff] %vm85_vm5, %v810_v25  ;;  %vm946_vm3 = vweird.f32 %v1216_v24 }
 0x693   :  { %v777_v26 = vmul.f32 %v772_v27, %v1576_v43 }
 0x695   :  { %v801_v28 = vadd.f32 %v796_v22, %v777_v26 }
 0x697   :  { %vm805_vm0 = vcmp.gt.f32.partialorder %v801_v28, 0.0  ;;  %v809_v31 = vmul.f32 0.2, %v801_v28 }
 0x699   :  { %v813_v33 = vsel %vm805_vm0, %v801_v28, %v809_v31  ;;  %v850_v16 = vld [vmem:[#allocation2] sm:$0xff]  ;;  %v942_v28 = vmul.f32 32.0, %v1216_v24 }
 0x69a   :  { %828 = vrot.lane.b32.xlu2 %v813_v33, %s1248_s26  ;;  %817 = vst.msk [vmem:[#allocation2 + $0x18] sm:$0xff] %vm85_vm5, %v813_v33  ;;  %v786_v34 = vpop.permute.xlu1 %785  ;;  %879 = vperm.xlu1 %1172, %v869_v29  }
 0x69b   :  { %v799_v35 = vadd.f32 %v786_v34, %v775_v32 }
 0x69d   :  { %v807_v37 = vmul.f32 0.2, %v799_v35  ;;  %vm803_vm6 = vcmp.gt.f32.partialorder %v799_v35, 0.0 }
 0x69f   :  { %v811_v43 = vsel %vm803_vm6, %v799_v35, %v807_v37  ;;  %v943_v35 = vsub.f32 1.0, %v942_v28 }
 0x6a0   :  { %815 = vst.msk [vmem:[#allocation2 + $0x8] sm:$0xff] %vm85_vm5, %v811_v43  ;;  %824 = vrot.lane.b32.xlu0 %v811_v43, %s1248_s26  ;;  %s1095_s26 = sshll.u32 %s1738_s20, 4  ;;  %s1096_s26 = int_to_ptr.hbm [resolvable:$true] %s1095_s26 }
 0x6a1   :  { %v853_v42 = vld [vmem:[#allocation2 + $0x18] sm:$0xff] }
 0x6a2   :  { %874 = vperm.xlu2 %1173, %v868_v38   ;;  %1007 = vperm.xlu1 %1172, %v989_v39   ;;  %v863_v50 = vpack.c.bf16 %v853_v42, %v852_v10  ;;  %v944_v38 = vmul.f32 %v1216_v24, %v943_v35 }
 0x6a7   :  { %v851_v14 = vld [vmem:[#allocation2 + $0x8] sm:$0xff] }
 0x6a8   :  { %884 = vperm.xlu0 %1179, %v870_v41   ;;  %v862_v17 = vpack.c.bf16 %v851_v14, %v850_v16 }
 0x6aa   :  { %889 = vperm.xlu2 %1173, %v871_v40   ;;  %997 = vperm.xlu1 %1172, %v987_v44   ;;  %v945_v40 = vadd.f32 %v1216_v24, %v944_v38 }
 0x6b0   :  { %1002 = vperm.xlu0 %1179, %v988_v46  }
 0x6b2   :  { %1035 = vperm.xlu2 %1173, %v1017_v47   ;;  %1025 = vperm.xlu1 %1172, %v1015_v48   ;;  %v947_v47 = vsel %vm946_vm3, %v1216_v24, %v945_v40 }
 0x6b8   :  { %1030 = vperm.xlu0 %1179, %v1016_v49  }
 0x6ba   :  { %992 = vperm.xlu2 %1173, %v986_v51  }
 0x6c0   :  { %1020 = vperm.xlu0 %1179, %v1014_v52  }
 0x6c2   :  { %1058 = vperm.xlu2 %1173, %v1055_v53  }
 0x6f4   :  { %v827_v0 = vpop.permute.xlu0 %826  ;;  %v829_v2 = vpop.permute.xlu2 %828 }
 0x6f5   :  { %836 = vst.msk [vmem:[#allocation2 + $0x30] sm:$0xff] %vm85_vm5, %v827_v0 }
 0x6f6   :  { %837 = vst.msk [vmem:[#allocation2 + $0x38] sm:$0xff] %vm85_vm5, %v829_v2 }
 0x6fc   :  { %v856_v3 = vld [vmem:[#allocation2 + $0x30] sm:$0xff]  ;;  %v875_v15 = vpop.permute.xlu2 %874 }
 0x6fd   :  { %v857_v4 = vld [vmem:[#allocation2 + $0x38] sm:$0xff] }
 0x6fe   :  { %v865_v36 = vpack.c.bf16 %v857_v4, %v856_v3 }
 0x700   :  { %913 = vmatpush.bf16.msra.mxu3 %v865_v36 }
 0x704   :  { %v823_v45 = vpop.permute.xlu1 %822  ;;  %v890_v30 = vpop.permute.xlu2 %889 }
 0x705   :  { %834 = vst.msk [vmem:[#allocation2 + $0x20] sm:$0xff] %vm85_vm5, %v823_v45 }
 0x70c   :  { %v854_v8 = vld [vmem:[#allocation2 + $0x20] sm:$0xff]  ;;  %v880_v19 = vpop.permute.xlu1 %879  ;;  %v1036_v16 = vpop.permute.xlu2 %1035 }
 0x712   :  { %v825_v6 = vpop.permute.xlu0 %824 }
 0x713   :  { %835 = vst.msk [vmem:[#allocation2 + $0x28] sm:$0xff] %vm85_vm5, %v825_v6 }
 0x714   :  { %v1008_v42 = vpop.permute.xlu1 %1007 }
 0x71a   :  { %v855_v7 = vld [vmem:[#allocation2 + $0x28] sm:$0xff]  ;;  %v885_v21 = vpop.permute.xlu0 %884 }
 0x71b   :  { %v864_v9 = vpack.c.bf16 %v855_v7, %v854_v8 }
 0x71d   :  { %914 = vmatpush.bf16.msra.mxu3 %v864_v9 }
 0x721   :  { %915 = vmatpush.bf16.msra.mxu3 %v863_v50 }
 0x722   :  { %v1003_v10 = vpop.permute.xlu0 %1002 }
 0x725   :  { %916 = vmatpush.bf16.msra.mxu3 %v862_v17 }
 0x728   :  { %1150 = vmatmul.msk.bf16.vlgmr.msra.gmra.mxu3 %vm902_vm2, %v1156_v18  ;;  %v998_v18 = vpop.permute.xlu1 %997 }
 0x738   :  { %1151 = vmatmul.msk.bf16.gmra.mxu3 %vm902_vm2, %v1157_v11 }
 0x7ab   :  { %v918_v1 = vpop.f32.mrf.mxu3 }
 0x7ac   :  { %v919_v22 = vadd.f32 %v918_v1, %v875_v15  ;;  %v1031_v1 = vpop.permute.xlu0 %1030 }
 0x7ae   :  { %v928_v27 = vsel %vm85_vm5, %v919_v22, 0.0 }
 0x7b3   :  { %v920_v5 = vpop.f32.mrf.mxu3 }
 0x7b4   :  { %v921_v12 = vadd.f32 %v920_v5, %v880_v19 }
 0x7b6   :  { %v929_v25 = vsel %vm85_vm5, %v921_v12, 0.0 }
 0x7b7   :  { %v930_v31 = vadd.f32 %v929_v25, %v928_v27 }
 0x7bb   :  { %v923_v20 = vpop.f32.mrf.mxu3 }
 0x7bc   :  { %v924_v23 = vadd.f32 %v923_v20, %v885_v21 }
 0x7be   :  { %v931_v26 = vsel %vm85_vm5, %v924_v23, 0.0 }
 0x7bf   :  { %v932_v33 = vadd.f32 %v931_v26, %v930_v31  ;;  %v1026_v26 = vpop.permute.xlu1 %1025 }
 0x7c3   :  { %v925_v29 = vpop.f32.mrf.mxu3 }
 0x7c4   :  { %v926_v32 = vadd.f32 %v925_v29, %v890_v30  ;;  %v1021_v29 = vpop.permute.xlu0 %1020 }
 0x7c6   :  { %v933_v34 = vsel %vm85_vm5, %v926_v32, 0.0 }
 0x7c7   :  { %v934_v37 = vadd.f32 %v933_v34, %v932_v33 }
 0x7c9   :  { %v935_v43 = vrot.slane %v934_v37, 4 }
 0x7cb   :  { %v936_v39 = vadd.f32 %v935_v43, %v934_v37 }
 0x7cd   :  { %v937_v41 = vrot.slane %v936_v39, 2 }
 0x7cf   :  { %v938_v44 = vadd.f32 %v937_v41, %v936_v39  ;;  %v1054_v41 = vld [vmem:[%s1736_s18] sm:$0x1] }
 0x7d1   :  { %v939_v46 = vrot.slane %v938_v44, 1 }
 0x7d3   :  { %v940_v48 = vadd.f32 %v939_v46, %v938_v44 }
 0x7d5   :  { %v948_v49 = vmul.f32 %v947_v47, %v940_v48 }
 0x7d7   :  { %v949_v51 = vsub.f32 %v919_v22, %v948_v49  ;;  %v950_v52 = vsub.f32 %v921_v12, %v948_v49  ;;  %v951_v53 = vsub.f32 %v924_v23, %v948_v49  ;;  %v952_v54 = vsub.f32 %v926_v32, %v948_v49  ;;  %v993_v22 = vpop.permute.xlu2 %992 }
 0x7d9   :  { %v953_v55 = vmul.f32 %v949_v51, %v949_v51  ;;  %v954_v56 = vmul.f32 %v950_v52, %v950_v52  ;;  %v955_v57 = vmul.f32 %v951_v53, %v951_v53  ;;  %v956_v58 = vmul.f32 %v952_v54, %v952_v54 }
 0x7db   :  { %v957_v59 = vsel %vm85_vm5, %v953_v55, 0.0  ;;  %v958_v60 = vsel %vm85_vm5, %v954_v56, 0.0  ;;  %v960_v62 = vsel %vm85_vm5, %v955_v57, 0.0  ;;  %v962_v0 = vsel %vm85_vm5, %v956_v58, 0.0 }
 0x7dc   :  { %v959_v61 = vadd.f32 %v958_v60, %v957_v59 }
 0x7de   :  { %v961_v63 = vadd.f32 %v960_v62, %v959_v61 }
 0x7df   :  { %v1059_v44 = vpop.permute.xlu2 %1058 }
 0x7e0   :  { %v963_v2 = vadd.f32 %v962_v0, %v961_v63  ;;  %v1061_v46 = vperm.slane %v1059_v44, 0 }
 0x7e2   :  { %v964_v3 = vrot.slane %v963_v2, 4 }
 0x7e4   :  { %v965_v4 = vadd.f32 %v964_v3, %v963_v2 }
 0x7e6   :  { %v966_v36 = vrot.slane %v965_v4, 2 }
 0x7e8   :  { %v967_v45 = vadd.f32 %v966_v36, %v965_v4 }
 0x7ea   :  { %v968_v6 = vrot.slane %v967_v45, 1 }
 0x7ec   :  { %v969_v8 = vadd.f32 %v968_v6, %v967_v45 }
 0x7ee   :  { %v970_v7 = vmul.f32 %v969_v8, %v947_v47 }
 0x7f0   :  { %v971_v9 = vadd.f32 1e-05, %v970_v7 }
 0x7f2   :  { %1217 = vrsqrt.f32 %v971_v9  ;;  %vm978_vm4 = vweird.f32 %v971_v9 }
 0x7f8   :  { %v1218_v50 = vpop.eup %1217 }
 0x7f9   :  { %v973_v14 = vmul.f32 %v1218_v50, %v971_v9  ;;  %vm979_vm5 = vweird.f32 %v1218_v50 }
 0x7fa   :  { %vm980_vm7 = vmor %vm978_vm4, %vm979_vm5 }
 0x7fb   :  { %v974_v17 = vmul.f32 %v1218_v50, %v973_v14 }
 0x7fd   :  { %v975_v11 = vmul.f32 0.5, %v974_v17 }
 0x7ff   :  { %v976_v5 = vsub.f32 1.5, %v975_v11 }
 0x801   :  { %v977_v15 = vmul.f32 %v1218_v50, %v976_v5 }
 0x803   :  { %v981_v13 = vsel %vm980_vm7, %v1218_v50, %v977_v15 }
 0x804   :  { %v985_v19 = vmul.f32 %v981_v13, %v952_v54  ;;  %v984_v20 = vmul.f32 %v981_v13, %v951_v53  ;;  %v983_v12 = vmul.f32 %v981_v13, %v950_v52  ;;  %v982_v21 = vmul.f32 %v981_v13, %v949_v51 }
 0x806   :  { %v1013_v23 = vmul.f32 %v1008_v42, %v985_v19  ;;  %v1012_v24 = vmul.f32 %v1003_v10, %v984_v20  ;;  %v1011_v25 = vmul.f32 %v998_v18, %v983_v12  ;;  %v1010_v27 = vmul.f32 %v993_v22, %v982_v21 }
 0x808   :  { %v1041_v28 = vadd.f32 %v1036_v16, %v1013_v23  ;;  %v1040_v30 = vadd.f32 %v1031_v1, %v1012_v24  ;;  %v1039_v31 = vadd.f32 %v1026_v26, %v1011_v25  ;;  %v1038_v34 = vadd.f32 %v1021_v29, %v1010_v27 }
 0x80a   :  { %vm1045_vm8 = vcmp.gt.f32.partialorder %v1041_v28, 0.0  ;;  %v1049_v32 = vmul.f32 0.2, %v1041_v28  ;;  %v1048_v33 = vmul.f32 0.2, %v1040_v30  ;;  %vm1044_vm9 = vcmp.gt.f32.partialorder %v1040_v30, 0.0 }
 0x80b   :  { %v1047_v37 = vmul.f32 0.2, %v1039_v31  ;;  %vm1043_vm10 = vcmp.gt.f32.partialorder %v1039_v31, 0.0  ;;  %v1046_v38 = vmul.f32 0.2, %v1038_v34  ;;  %vm1042_vm11 = vcmp.gt.f32.partialorder %v1038_v34, 0.0 }
 0x80c   :  { %v1053_v35 = vsel %vm1045_vm8, %v1041_v28, %v1049_v32  ;;  %v1052_v43 = vsel %vm1044_vm9, %v1040_v30, %v1048_v33 }
 0x80d   :  { %1078 = vmatpush.msra.mxu0 %v1053_v35  ;;  %v1051_v39 = vsel %vm1043_vm10, %v1039_v31, %v1047_v37  ;;  %v1050_v40 = vsel %vm1042_vm11, %v1038_v34, %v1046_v38 }
 0x80f   :  { %1079 = vmatpush.msra.mxu0 %v1052_v43 }
 0x811   :  { %1080 = vmatpush.msra.mxu0 %v1051_v39 }
 0x813   :  { %1081 = vmatpush.msra.mxu0 %v1050_v40 }
 0x814   :  { %1152 = vmatmul.msk.f32.vlgmr.msra.gmra.mxu0 %vm1062_vm12, %v1054_v41 }
 0x891   :  { %v1083_v47 = vpop.f32.mrf.mxu0 }
 0x892   :  { %v1084_v48 = vadd.f32 %v1083_v47, %v1061_v46 }
 0x894   :  { %1087 = vst.msk [vmem:[#allocation4] sm:$0x1] %vm1086_vm13, %v1084_v48 }
 0x895   :  { %1098 = dma.vmem_to_hbm [thread:$0]  %s1094_s7, 16, %s1096_s26, [#allocation5]  }
 0x896   :  { %1243 = dma.done.wait [#allocation5], 16  }
 0x897   :  { %1244 = vsyncadd [#allocation5], 4294967280 }
 0x898   :  { %1103 = vsyncpa [#allocation5], 1 }

</bundles_post_ra>
